<compile_context>
chip_gen: v6e
topology: v6e:2x2x1
jax: 0.10.0
libtpu: 0.0.40
codegen_flags: <defaults>
</compile_context>

<pallas_src>
import jax
import jax.numpy as jnp
from jax.experimental import pallas as pl
from jax.experimental.pallas import tpu as pltpu

NUM_OPTIONS = 6
OUTPUT_LENGTH = 4 * NUM_OPTIONS          # 24
BRAIN_INPUT_LENGTH = 48
HIDDEN = 3000

H_PAD = 3072                             # 3000 -> next multiple of 128
DOUT_PAD = 128                           # 24   -> lane-dense output slab


def _round_up(n, m):
    return ((n + m - 1) // m) * m


def _brain_kernel(x_ref, w1_ref, b1_ref, w2_ref, b2_ref, o_ref):
    # fc1 + ReLU (bf16 MXU matmul, f32 accumulation, f32 bias)
    xb = x_ref[...].astype(jnp.bfloat16)
    h = jnp.dot(xb, w1_ref[...], preferred_element_type=jnp.float32)
    h = jnp.maximum(h + b1_ref[...], 0.0)
    # fc2
    hb = h.astype(jnp.bfloat16)
    y = jnp.dot(hb, w2_ref[...], preferred_element_type=jnp.float32)
    y = y + b2_ref[...]
    # sigmoid: exp on EUP, reciprocal on EUP (approx) -> off the VALU
    o_ref[...] = pl.reciprocal(1.0 + jnp.exp(-y), approx=True).astype(o_ref.dtype)


def brain_forward(x, w1p, b1p, w2p, b2p, *, tb=512):
    """x: [B, BRAIN_INPUT_LENGTH] f32 -> [B, OUTPUT_LENGTH] f32.

    w1p/b1p/w2p/b2p are the padded kernel-layout params from prepare_params().
    """
    B, Din = x.shape
    assert Din == BRAIN_INPUT_LENGTH
    assert w1p.shape == (BRAIN_INPUT_LENGTH, H_PAD)
    assert b1p.shape == (1, H_PAD)
    assert w2p.shape == (H_PAD, DOUT_PAD)
    assert b2p.shape == (1, DOUT_PAD)

    # Batch tile: multiple of 8 sublanes, capped at `tb`; pad batch to a
    # whole number of tiles (padded rows are discarded on return).
    TB = min(tb, _round_up(B, 8))
    Bp = _round_up(B, TB)
    if Bp != B:
        x = jnp.pad(x, ((0, Bp - B), (0, 0)))

    grid = (pl.cdiv(Bp, TB),)

    out = pl.pallas_call(
        _brain_kernel,
        out_shape=jax.ShapeDtypeStruct((Bp, DOUT_PAD), jnp.float32),
        grid_spec=pltpu.PrefetchScalarGridSpec(
            num_scalar_prefetch=0,
            grid=grid,
            in_specs=[
                pl.BlockSpec((TB, Din), lambda i: (i, 0)),       # x: batch-tiled
                pl.BlockSpec((Din, H_PAD), lambda i: (0, 0)),    # W1: resident
                pl.BlockSpec((1, H_PAD), lambda i: (0, 0)),      # b1: resident
                pl.BlockSpec((H_PAD, DOUT_PAD), lambda i: (0, 0)),  # W2: resident
                pl.BlockSpec((1, DOUT_PAD), lambda i: (0, 0)),   # b2: resident
            ],
            out_specs=pl.BlockSpec((TB, DOUT_PAD), lambda i: (i, 0)),
        ),
        compiler_params=pltpu.CompilerParams(
            dimension_semantics=("parallel",),   # independent batch tiles
        ),
    )(x, w1p, b1p, w2p, b2p)

    return out[:B, :OUTPUT_LENGTH]


def init_params(key):
    """Deterministic init mimicking torch.nn.Linear (uniform +/- 1/sqrt(fan_in)).

    Returned in math layout [in, out] (i.e. already transposed vs PyTorch)."""
    k1, k2, k3, k4 = jax.random.split(key, 4)
    bound1 = 1.0 / jnp.sqrt(jnp.float32(BRAIN_INPUT_LENGTH))
    bound2 = 1.0 / jnp.sqrt(jnp.float32(HIDDEN))
    w1 = jax.random.uniform(k1, (BRAIN_INPUT_LENGTH, HIDDEN),
                            jnp.float32, -bound1, bound1)
    b1 = jax.random.uniform(k2, (1, HIDDEN), jnp.float32, -bound1, bound1)
    w2 = jax.random.uniform(k3, (HIDDEN, OUTPUT_LENGTH),
                            jnp.float32, -bound2, bound2)
    b2 = jax.random.uniform(k4, (1, OUTPUT_LENGTH), jnp.float32, -bound2, bound2)
    return w1, b1, w2, b2


def prepare_params(w1, b1, w2, b2):
    """Pad HIDDEN->3072 and OUT->128 (zeros) and cast weights to bf16."""
    w1p = jnp.zeros((BRAIN_INPUT_LENGTH, H_PAD), jnp.bfloat16)
    w1p = w1p.at[:, :HIDDEN].set(w1.astype(jnp.bfloat16))
    b1p = jnp.zeros((1, H_PAD), jnp.float32).at[:, :HIDDEN].set(b1)
    w2p = jnp.zeros((H_PAD, DOUT_PAD), jnp.bfloat16)
    w2p = w2p.at[:HIDDEN, :OUTPUT_LENGTH].set(w2.astype(jnp.bfloat16))
    b2p = jnp.zeros((1, DOUT_PAD), jnp.float32).at[:, :OUTPUT_LENGTH].set(b2)
    return w1p, b1p, w2p, b2p


def _reference(x, w1p, b1p, w2p, b2p):
    """f32 reference using the same (bf16-rounded, padded) parameters."""
    w1 = w1p[:, :HIDDEN].astype(jnp.float32)
    b1 = b1p[:, :HIDDEN]
    w2 = w2p[:HIDDEN, :OUTPUT_LENGTH].astype(jnp.float32)
    b2 = b2p[:, :OUTPUT_LENGTH]
    h = jnp.maximum(x @ w1 + b1, 0.0)
    return jax.nn.sigmoid(h @ w2 + b2)


if __name__ == "__main__":
    key = jax.random.PRNGKey(0)
    kx, kp = jax.random.split(key)

    B = 8
    x = jax.random.uniform(kx, (B, BRAIN_INPUT_LENGTH), jnp.float32)
    w1, b1, w2, b2 = init_params(kp)
    w1p, b1p, w2p, b2p = prepare_params(w1, b1, w2, b2)

    out = brain_forward(x, w1p, b1p, w2p, b2p)
    out = jax.block_until_ready(out)

    ref = _reference(x, w1p, b1p, w2p, b2p)
    assert out.shape == (B, OUTPUT_LENGTH)
    # bf16 activations in the kernel + approx reciprocal -> modest tolerance
    assert jnp.allclose(out, ref, atol=1e-2, rtol=0.0), float(
        jnp.max(jnp.abs(out - ref)))

    print("KERNEL_OK")
</pallas_src>

<mosaic_0001>
module attributes {stable_mosaic.version = 11 : i64} {
  func.func @_brain_kernel(%arg0: i32, %arg1: memref<8x48xf32, #tpu.memory_space<vmem>>, %arg2: memref<48x3072xbf16, #tpu.memory_space<vmem>>, %arg3: memref<1x3072xf32, #tpu.memory_space<vmem>>, %arg4: memref<3072x128xbf16, #tpu.memory_space<vmem>>, %arg5: memref<1x128xf32, #tpu.memory_space<vmem>>, %arg6: memref<8x128xf32, #tpu.memory_space<vmem>>) attributes {dimension_semantics = [#tpu.dimension_semantics<parallel>], iteration_bounds = array<i64: 1>, scalar_prefetch = 0 : i64, scratch_operands = 0 : i64, tpu.core_type = #tpu.core_type<tc>, window_params = [{transform_indices = @transform_0, window_bounds = array<i64: 8, 48>}, {pipeline_mode = #tpu.pipeline_mode<synchronous>, transform_indices = @transform_1, window_bounds = array<i64: 48, 3072>}, {pipeline_mode = #tpu.pipeline_mode<synchronous>, transform_indices = @transform_2, window_bounds = array<i64: 1, 3072>}, {pipeline_mode = #tpu.pipeline_mode<synchronous>, transform_indices = @transform_3, window_bounds = array<i64: 3072, 128>}, {pipeline_mode = #tpu.pipeline_mode<synchronous>, transform_indices = @transform_4, window_bounds = array<i64: 1, 128>}, {transform_indices = @transform_5, window_bounds = array<i64: 8, 128>}]} {
    %c0 = arith.constant 0 : index
    %c0_0 = arith.constant 0 : index
    %0 = vector.load %arg1[%c0, %c0_0] : memref<8x48xf32, #tpu.memory_space<vmem>>, vector<8x48xf32>
    %1 = arith.truncf %0 : vector<8x48xf32> to vector<8x48xbf16>
    %c0_1 = arith.constant 0 : index
    %c0_2 = arith.constant 0 : index
    %2 = vector.load %arg2[%c0_1, %c0_2] : memref<48x3072xbf16, #tpu.memory_space<vmem>>, vector<48x3072xbf16>
    %cst = arith.constant dense<0.000000e+00> : vector<8x3072xf32>
    %3 = tpu.matmul %1, %2, %cst {dimension_numbers = #tpu.dot_dimension_numbers<[1], [0], [0], [1], [0, 0, 1, 1], [], []>} : vector<8x48xbf16>, vector<48x3072xbf16>, vector<8x3072xf32> -> vector<8x3072xf32>
    %c0_3 = arith.constant 0 : index
    %c0_4 = arith.constant 0 : index
    %4 = vector.load %arg3[%c0_3, %c0_4] : memref<1x3072xf32, #tpu.memory_space<vmem>>, vector<1x3072xf32>
    %5 = vector.broadcast %4 : vector<1x3072xf32> to vector<8x3072xf32>
    %6 = arith.addf %3, %5 : vector<8x3072xf32>
    %cst_5 = arith.constant 0.000000e+00 : f32
    %7 = vector.broadcast %cst_5 : f32 to vector<8x3072xf32>
    %8 = arith.maximumf %6, %7 : vector<8x3072xf32>
    %9 = arith.truncf %8 : vector<8x3072xf32> to vector<8x3072xbf16>
    %c0_6 = arith.constant 0 : index
    %c0_7 = arith.constant 0 : index
    %10 = vector.load %arg4[%c0_6, %c0_7] : memref<3072x128xbf16, #tpu.memory_space<vmem>>, vector<3072x128xbf16>
    %cst_8 = arith.constant dense<0.000000e+00> : vector<8x128xf32>
    %11 = tpu.matmul %9, %10, %cst_8 {dimension_numbers = #tpu.dot_dimension_numbers<[1], [0], [0], [1], [0, 0, 1, 1], [], []>} : vector<8x3072xbf16>, vector<3072x128xbf16>, vector<8x128xf32> -> vector<8x128xf32>
    %c0_9 = arith.constant 0 : index
    %c0_10 = arith.constant 0 : index
    %12 = vector.load %arg5[%c0_9, %c0_10] : memref<1x128xf32, #tpu.memory_space<vmem>>, vector<1x128xf32>
    %13 = vector.broadcast %12 : vector<1x128xf32> to vector<8x128xf32>
    %14 = arith.addf %11, %13 : vector<8x128xf32>
    %cst_11 = arith.constant 0.000000e+00 : f32
    %15 = vector.broadcast %cst_11 : f32 to vector<8x128xf32>
    %16 = arith.subf %15, %14 : vector<8x128xf32>
    %17 = math.exp %16 : vector<8x128xf32>
    %cst_12 = arith.constant 1.000000e+00 : f32
    %18 = vector.broadcast %cst_12 : f32 to vector<8x128xf32>
    %19 = arith.addf %18, %17 : vector<8x128xf32>
    %20 = tpu.reciprocal %19 {approx = true} : vector<8x128xf32> -> vector<8x128xf32>
    %c0_13 = arith.constant 0 : index
    %c0_14 = arith.constant 0 : index
    %21 = vector.load %arg6[%c0_13, %c0_14] : memref<8x128xf32, #tpu.memory_space<vmem>>, vector<8x128xf32>
    tpu.vector_store %arg6[%c0_13, %c0_14], %20 {strides = array<i32>} : memref<8x128xf32, #tpu.memory_space<vmem>>, vector<8x128xf32>,
    return
  }
  func.func @transform_0(%arg0: i32) -> (i32, i32) {
    %c0_i32 = arith.constant 0 : i32
    %c0_i32_0 = arith.constant 0 : i32
    return %arg0, %c0_i32 : i32, i32
  }
  func.func @transform_1(%arg0: i32) -> (i32, i32) {
    %c0_i32 = arith.constant 0 : i32
    %c0_i32_0 = arith.constant 0 : i32
    %c0_i32_1 = arith.constant 0 : i32
    return %c0_i32, %c0_i32_0 : i32, i32
  }
  func.func @transform_2(%arg0: i32) -> (i32, i32) {
    %c0_i32 = arith.constant 0 : i32
    %c0_i32_0 = arith.constant 0 : i32
    %c0_i32_1 = arith.constant 0 : i32
    return %c0_i32, %c0_i32_0 : i32, i32
  }
  func.func @transform_3(%arg0: i32) -> (i32, i32) {
    %c0_i32 = arith.constant 0 : i32
    %c0_i32_0 = arith.constant 0 : i32
    %c0_i32_1 = arith.constant 0 : i32
    return %c0_i32, %c0_i32_0 : i32, i32
  }
  func.func @transform_4(%arg0: i32) -> (i32, i32) {
    %c0_i32 = arith.constant 0 : i32
    %c0_i32_0 = arith.constant 0 : i32
    %c0_i32_1 = arith.constant 0 : i32
    return %c0_i32, %c0_i32_0 : i32, i32
  }
  func.func @transform_5(%arg0: i32) -> (i32, i32) {
    %c0_i32 = arith.constant 0 : i32
    %c0_i32_0 = arith.constant 0 : i32
    return %arg0, %c0_i32 : i32, i32
  }
}

</mosaic_0001>

<bundles_post_ra>
// kernel: tpu_custom_call.1
= control target key start
LH: loop header
LB: loop body
LE: loop exit
PB: predicated region body
PF: predicated region fallthrough
CT: control target
= control target key end

     0   :  { %10 = vsyncpa [#allocation3], 0  ;;  %s4299_s0 = inlined_call_operand.hbm [shape: f32[8,48], index: 0, kind: input, shape index: {}]   ;;  %s4300_s1 = inlined_call_operand.hbm [shape: bf16[48,3072], index: 1, kind: input, shape index: {}]   ;;  %s4301_s2 = inlined_call_operand.hbm [shape: f32[1,3072], index: 2, kind: input, shape index: {}]   ;;  %s4302_s3 = inlined_call_operand.hbm [shape: bf16[3072,128], index: 3, kind: input, shape index: {}]   ;;  %s4303_s4 = inlined_call_operand.vmem [shape: f32[1,128], index: 4, kind: input, shape index: {}]   ;;  %s4304_s5 = inlined_call_operand.hbm [shape: f32[8,128], index: 5, kind: output, shape index: {}]  }
   0x1   :  { %11 = vsyncpa [#allocation6], 0 }
   0x2   :  { %12 = vsyncpa [#allocation9], 0 }
   0x3   :  { %13 = vsyncpa [#allocation4], 0  ;;  %s4078_s18 = smov [#allocation5]  }
   0x4   :  { %s29_s19 = sshll.u32 %s4078_s18, 4  ;;  %s30_s19 = int_to_ptr.vmem [resolvable:$true] %s29_s19 }
   0x5   :  { %s3978_s20 = scalar_lea.vmem %s30_s19, 9216  ;;  %p3983_p1 = scmp.lt.s32.totalorder %s30_s19, %s30_s19 }
   0x6   :  { %p3979_p0 = scmp.ne.s32.totalorder %s30_s19, %s3978_s20  ;;  %p3984_p2 = scmp.lt.s32.totalorder %s3978_s20, %s3978_s20 }
   0x8   :  { %p3985_p3 = por %p3984_p2, %p3983_p1 }
   0xa   :  { %p3986_p4 = pnand %p3985_p3, %p3979_p0 }
   0xc   :  { %3989 = shalt.err (!%p3986_p4)
}
   0xd   :  { %s4079_s21 = smov 1536   ;;  %s4080_s22 = smov 96  }
   0xe   :  { %35 = dma.hbm_to_vmem [thread:$0]  %s4300_s1, 9216, %s30_s19, [#allocation6], %s4079_s21, %s4079_s21, %s4080_s22  }
   0xf   :  { %s4081_s25 = smov [#allocation2]   ;;  %s4082_s27 = smov [#allocation7]  }
  0x10   :  { %s20_s26 = sshll.u32 %s4081_s25, 4  ;;  %s42_s28 = sshll.u32 %s4082_s27, 4  ;;  %s21_s26 = int_to_ptr.vmem [resolvable:$true] %s20_s26  ;;  %s43_s28 = int_to_ptr.vmem [resolvable:$true] %s42_s28 }
  0x11   :  { %s3998_s29 = scalar_lea.vmem %s21_s26, 128  ;;  %p4003_p6 = scmp.lt.s32.totalorder %s21_s26, %s21_s26 }
  0x12   :  { %p3999_p5 = scmp.ne.s32.totalorder %s21_s26, %s3998_s29  ;;  %p4004_p7 = scmp.lt.s32.totalorder %s3998_s29, %s3998_s29 }
  0x14   :  { %p4005_p8 = por %p4004_p7, %p4003_p6 }
  0x16   :  { %p4006_p9 = pnand %p4005_p8, %p3999_p5 }
  0x18   :  { %4009 = shalt.err (!%p4006_p9)
}
  0x19   :  { %23 = dma.hbm_to_vmem [thread:$0]  %s4299_s0, 128, %s21_s26, [#allocation3]  }
  0x1a   :  { %s4018_s7 = scalar_lea.vmem %s43_s28, 384  ;;  %p4023_p11 = scmp.lt.s32.totalorder %s43_s28, %s43_s28 }
  0x1b   :  { %p4019_p10 = scmp.ne.s32.totalorder %s43_s28, %s4018_s7  ;;  %p4024_p12 = scmp.lt.s32.totalorder %s4018_s7, %s4018_s7 }
  0x1d   :  { %p4025_p13 = por %p4024_p12, %p4023_p11 }
  0x1f   :  { %p4026_p0 = pnand %p4025_p13, %p4019_p10 }
  0x21   :  { %4029 = shalt.err (!%p4026_p0)
}
  0x22   :  { %45 = dma.hbm_to_vmem [thread:$0]  %s4301_s2, 384, %s43_s28, [#allocation6]  }
  0x23   :  { %s4083_s9 = smov [#allocation8]  }
  0x24   :  { %s51_s10 = sshll.u32 %s4083_s9, 4  ;;  %s52_s10 = int_to_ptr.vmem [resolvable:$true] %s51_s10 }
  0x25   :  { %s4038_s11 = scalar_lea.vmem %s52_s10, 24576  ;;  %p4043_p2 = scmp.lt.s32.totalorder %s52_s10, %s52_s10 }
  0x26   :  { %p4039_p1 = scmp.ne.s32.totalorder %s52_s10, %s4038_s11  ;;  %p4044_p3 = scmp.lt.s32.totalorder %s4038_s11, %s4038_s11 }
  0x28   :  { %p4045_p4 = por %p4044_p3, %p4043_p2 }
  0x2a   :  { %p4046_p5 = pnand %p4045_p4, %p4039_p1 }
  0x2c   :  { %4049 = shalt.err (!%p4046_p5)
}
  0x2d   :  { %s4084_s0 = smov 64   ;;  %s4085_s12 = smov 4  }
  0x2e   :  { %57 = dma.hbm_to_vmem [thread:$0]  %s4302_s3, 24576, %s52_s10, [#allocation9], %s4084_s0, %s4084_s0, %s4085_s12  }
  0x2f   :  { %4070 = dma.done.wait [#allocation3], 128  }
  0x30   :  { %4071 = vsyncadd [#allocation3], 4294967168 }
  0x31   :  { %4072 = dma.done.wait [#allocation6], 9600  }
  0x32   :  { %4073 = vsyncadd [#allocation6], 4294957696 }
  0x33   :  { %4074 = dma.done.wait [#allocation9], 24576  }
  0x34   :  { %4075 = vsyncadd [#allocation9], 4294942720  ;;  %v4086_v0 = vmov 0   ;;  %v123_v1 = vld [vmem:[#allocation5 + $0x180] sm:$0xff]  ;;  %v124_v3 = vld [vmem:[#allocation5 + $0x188] sm:$0xff]  ;;  %vm633_vm0 = vcmask 392192  }
  0x35   :  { %669 = vmatprep.mubr.bf16.mxu0 %v4086_v0  ;;  %710 = vmatprep.mubr.bf16.mxu1 %v4086_v0  ;;  %v135_v2 = vld [vmem:[#allocation5 + $0x1e0] sm:$0xff]  ;;  %v136_v5 = vld [vmem:[#allocation5 + $0x1e8] sm:$0xff]  ;;  %v125_v23 = vld [vmem:[#allocation5 + $0x190] sm:$0xff] }
  0x36   :  { %v3272_v4 = vcombine.high %v123_v1, %v135_v2  ;;  %v3271_v6 = vcombine.low %v123_v1, %v135_v2  ;;  %v99_v7 = vld [vmem:[#allocation5 + $0xc0] sm:$0xff]  ;;  %v3274_v9 = vcombine.high %v124_v3, %v136_v5  ;;  %v3273_v10 = vcombine.low %v124_v3, %v136_v5  ;;  %v100_v12 = vld [vmem:[#allocation5 + $0xc8] sm:$0xff]  ;;  %v137_v24 = vld [vmem:[#allocation5 + $0x1f0] sm:$0xff] }
  0x37   :  { %v111_v8 = vld [vmem:[#allocation5 + $0x120] sm:$0xff]  ;;  %v112_v13 = vld [vmem:[#allocation5 + $0x128] sm:$0xff]  ;;  %v126_v25 = vld [vmem:[#allocation5 + $0x198] sm:$0xff]  ;;  %v3276_v30 = vcombine.high %v125_v23, %v137_v24  ;;  %v3275_v37 = vcombine.low %v125_v23, %v137_v24 }
  0x38   :  { %v3248_v11 = vcombine.high %v99_v7, %v111_v8  ;;  %v75_v14 = vld [vmem:[#allocation5] sm:$0xff]  ;;  %647 = vmatprep.subr.bf16.mxu0 %v3272_v4  ;;  %v3250_v15 = vcombine.high %v100_v12, %v112_v13  ;;  %v76_v17 = vld [vmem:[#allocation5 + $0x8] sm:$0xff]  ;;  %688 = vmatprep.subr.bf16.mxu1 %v3274_v9  ;;  %v3247_v19 = vcombine.low %v99_v7, %v111_v8  ;;  %v138_v26 = vld [vmem:[#allocation5 + $0x1f8] sm:$0xff] }
  0x39   :  { %v87_v16 = vld [vmem:[#allocation5 + $0x60] sm:$0xff]  ;;  %v88_v18 = vld [vmem:[#allocation5 + $0x68] sm:$0xff]  ;;  %648 = vmatpush1.bf16.msra.mxu0 %v3271_v6  ;;  %689 = vmatpush1.bf16.msra.mxu1 %v3273_v10  ;;  %v3249_v20 = vcombine.low %v100_v12, %v112_v13  ;;  %v73_v28 = vld [vmem:[#allocation2] sm:$0xff]  ;;  %v3278_v31 = vcombine.high %v126_v25, %v138_v26  ;;  %v3277_v38 = vcombine.low %v126_v25, %v138_v26 }
  0x3a   :  { %649 = vmatprep.subr.bf16.mxu0 %v3248_v11  ;;  %v3224_v21 = vcombine.high %v75_v14, %v87_v16  ;;  %690 = vmatprep.subr.bf16.mxu1 %v3250_v15  ;;  %v3226_v22 = vcombine.high %v76_v17, %v88_v18  ;;  %v3223_v27 = vcombine.low %v75_v14, %v87_v16  ;;  %v101_v32 = vld [vmem:[#allocation5 + $0xd0] sm:$0xff]  ;;  %v102_v35 = vld [vmem:[#allocation5 + $0xd8] sm:$0xff]  ;;  %v127_v49 = vld [vmem:[#allocation5 + $0x1a0] sm:$0xff] }
  0x3b   :  { %v3225_v29 = vcombine.low %v76_v17, %v88_v18  ;;  %v113_v33 = vld [vmem:[#allocation5 + $0x130] sm:$0xff]  ;;  %v4132_v34 = vpack.c.bf16 %v73_v28, %v73_v28  ;;  %v114_v36 = vld [vmem:[#allocation5 + $0x138] sm:$0xff]  ;;  %v139_v50 = vld [vmem:[#allocation5 + $0x200] sm:$0xff] }
  0x3c   :  { %v3252_v39 = vcombine.high %v101_v32, %v113_v33  ;;  %v3254_v40 = vcombine.high %v102_v35, %v114_v36  ;;  %v77_v41 = vld [vmem:[#allocation5 + $0x10] sm:$0xff]  ;;  %v78_v43 = vld [vmem:[#allocation5 + $0x18] sm:$0xff]  ;;  %v3251_v45 = vcombine.low %v101_v32, %v113_v33  ;;  %v3253_v46 = vcombine.low %v102_v35, %v114_v36  ;;  %v128_v51 = vld [vmem:[#allocation5 + $0x1a8] sm:$0xff] }
  0x3d   :  { %650 = vmatpush1.bf16.msra.mxu0 %v3247_v19  ;;  %691 = vmatpush1.bf16.msra.mxu1 %v3249_v20  ;;  %v89_v42 = vld [vmem:[#allocation5 + $0x70] sm:$0xff]  ;;  %v90_v44 = vld [vmem:[#allocation5 + $0x78] sm:$0xff]  ;;  %v140_v52 = vld [vmem:[#allocation5 + $0x208] sm:$0xff]  ;;  %v3280_v55 = vcombine.high %v127_v49, %v139_v50  ;;  %v3279_v61 = vcombine.low %v127_v49, %v139_v50 }
  0x3e   :  { %651 = vmatprep.subr.bf16.mxu0 %v3224_v21  ;;  %692 = vmatprep.subr.bf16.mxu1 %v3226_v22  ;;  %v3228_v47 = vcombine.high %v77_v41, %v89_v42  ;;  %v3230_v48 = vcombine.high %v78_v43, %v90_v44  ;;  %v3227_v53 = vcombine.low %v77_v41, %v89_v42  ;;  %v103_v57 = vld [vmem:[#allocation5 + $0xe0] sm:$0xff]  ;;  %v104_v59 = vld [vmem:[#allocation5 + $0xe8] sm:$0xff]  ;;  %v129_v7 = vld [vmem:[#allocation5 + $0x1b0] sm:$0xff] }
  0x3f   :  { %v3229_v54 = vcombine.low %v78_v43, %v90_v44  ;;  %v3282_v56 = vcombine.high %v128_v51, %v140_v52  ;;  %v115_v58 = vld [vmem:[#allocation5 + $0x140] sm:$0xff]  ;;  %v116_v60 = vld [vmem:[#allocation5 + $0x148] sm:$0xff]  ;;  %v3281_v63 = vcombine.low %v128_v51, %v140_v52  ;;  %v141_v10 = vld [vmem:[#allocation5 + $0x210] sm:$0xff] }
  0x40   :  { %v79_v62 = vld [vmem:[#allocation5 + $0x20] sm:$0xff]  ;;  %v3256_v1 = vcombine.high %v103_v57, %v115_v58  ;;  %v3258_v3 = vcombine.high %v104_v59, %v116_v60  ;;  %v80_v4 = vld [vmem:[#allocation5 + $0x28] sm:$0xff]  ;;  %v3255_v6 = vcombine.low %v103_v57, %v115_v58  ;;  %v3257_v8 = vcombine.low %v104_v59, %v116_v60  ;;  %v130_v12 = vld [vmem:[#allocation5 + $0x1b8] sm:$0xff] }
  0x41   :  { %652 = vmatpush1.bf16.msra.mxu0 %v3223_v27  ;;  %693 = vmatpush1.bf16.msra.mxu1 %v3225_v29  ;;  %v91_v2 = vld [vmem:[#allocation5 + $0x80] sm:$0xff]  ;;  %v92_v5 = vld [vmem:[#allocation5 + $0x88] sm:$0xff]  ;;  %v142_v13 = vld [vmem:[#allocation5 + $0x218] sm:$0xff]  ;;  %v3284_v17 = vcombine.high %v129_v7, %v141_v10  ;;  %v3283_v22 = vcombine.low %v129_v7, %v141_v10 }
  0x42   :  { %729 = vmatprep.subr.bf16.mxu0 %v3276_v30  ;;  %770 = vmatprep.subr.bf16.mxu1 %v3278_v31  ;;  %v3232_v9 = vcombine.high %v79_v62, %v91_v2  ;;  %v3234_v11 = vcombine.high %v80_v4, %v92_v5  ;;  %v3231_v14 = vcombine.low %v79_v62, %v91_v2  ;;  %v105_v15 = vld [vmem:[#allocation5 + $0xf0] sm:$0xff]  ;;  %v106_v20 = vld [vmem:[#allocation5 + $0xf8] sm:$0xff]  ;;  %v131_v31 = vld [vmem:[#allocation5 + $0x1c0] sm:$0xff] }
  0x43   :  { %v3233_v16 = vcombine.low %v80_v4, %v92_v5  ;;  %v117_v18 = vld [vmem:[#allocation5 + $0x150] sm:$0xff]  ;;  %v3286_v19 = vcombine.high %v130_v12, %v142_v13  ;;  %v118_v21 = vld [vmem:[#allocation5 + $0x158] sm:$0xff]  ;;  %v3285_v24 = vcombine.low %v130_v12, %v142_v13  ;;  %v143_v35 = vld [vmem:[#allocation5 + $0x220] sm:$0xff] }
  0x44   :  { %3295 = vmatmul.mubr.msk.bf16.vlgmr.msra.gmra.mxu0 %vm633_vm0, %v4132_v34  ;;  %3296 = vmatmul.mubr.msk.bf16.vlgmr.msra.gmra.mxu1 %vm633_vm0, %v4132_v34  ;;  %v81_v23 = vld [vmem:[#allocation5 + $0x30] sm:$0xff]  ;;  %v3260_v25 = vcombine.high %v105_v15, %v117_v18  ;;  %v3262_v27 = vcombine.high %v106_v20, %v118_v21  ;;  %v82_v28 = vld [vmem:[#allocation5 + $0x38] sm:$0xff]  ;;  %v3259_v30 = vcombine.low %v105_v15, %v117_v18  ;;  %v119_v43 = vld [vmem:[#allocation5 + $0x160] sm:$0xff] }
  0x45   :  { %730 = vmatpush1.bf16.msra.mxu0 %v3275_v37  ;;  %771 = vmatpush1.bf16.msra.mxu1 %v3277_v38  ;;  %v93_v26 = vld [vmem:[#allocation5 + $0x90] sm:$0xff]  ;;  %v94_v29 = vld [vmem:[#allocation5 + $0x98] sm:$0xff]  ;;  %v3261_v32 = vcombine.low %v106_v20, %v118_v21  ;;  %v132_v37 = vld [vmem:[#allocation5 + $0x1c8] sm:$0xff]  ;;  %v3288_v42 = vcombine.high %v131_v31, %v143_v35 }
  0x46   :  { %731 = vmatprep.subr.bf16.mxu0 %v3252_v39  ;;  %772 = vmatprep.subr.bf16.mxu1 %v3254_v40  ;;  %v3236_v33 = vcombine.high %v81_v23, %v93_v26  ;;  %v3238_v36 = vcombine.high %v82_v28, %v94_v29  ;;  %v144_v38 = vld [vmem:[#allocation5 + $0x228] sm:$0xff]  ;;  %v3235_v39 = vcombine.low %v81_v23, %v93_v26  ;;  %v107_v40 = vld [vmem:[#allocation5 + $0x100] sm:$0xff]  ;;  %v145_v57 = vld [vmem:[#allocation5 + $0x230] sm:$0xff] }
  0x47   :  { %751 = vmatprep.mubr.bf16.mxu0 %v4086_v0  ;;  %792 = vmatprep.mubr.bf16.mxu1 %v4086_v0  ;;  %v3237_v41 = vcombine.low %v82_v28, %v94_v29  ;;  %v3290_v44 = vcombine.high %v132_v37, %v144_v38  ;;  %v95_v49 = vld [vmem:[#allocation5 + $0xa0] sm:$0xff]  ;;  %v3289_v50 = vcombine.low %v132_v37, %v144_v38  ;;  %v84_v52 = vld [vmem:[#allocation5 + $0x48] sm:$0xff]  ;;  %v134_v60 = vld [vmem:[#allocation5 + $0x1d8] sm:$0xff] }
  0x48   :  { %v3264_v51 = vcombine.high %v107_v40, %v119_v43  ;;  %v121_v2 = vld [vmem:[#allocation5 + $0x170] sm:$0xff]  ;;  %v110_v5 = vld [vmem:[#allocation5 + $0x118] sm:$0xff]  ;;  %v3778_v26 = vld [vmem:[#allocation8 + $0x70] sm:$0xff]  }
  0x49   :  { %732 = vmatpush1.bf16.msra.mxu0 %v3251_v45  ;;  %773 = vmatpush1.bf16.msra.mxu1 %v3253_v46  ;;  %v108_v45 = vld [vmem:[#allocation5 + $0x108] sm:$0xff]  ;;  %v97_v10 = vld [vmem:[#allocation5 + $0xb0] sm:$0xff]  ;;  %v86_v13 = vld [vmem:[#allocation5 + $0x58] sm:$0xff] }
  0x4a   :  { %733 = vmatprep.subr.bf16.mxu0 %v3228_v47  ;;  %774 = vmatprep.subr.bf16.mxu1 %v3230_v48  ;;  %v120_v46 = vld [vmem:[#allocation5 + $0x168] sm:$0xff]  ;;  %v3287_v47 = vcombine.low %v131_v31, %v143_v35  ;;  %v83_v48 = vld [vmem:[#allocation5 + $0x40] sm:$0xff]  ;;  %v3774_v20 = vld [vmem:[#allocation8 + $0x78] sm:$0xff]  }
  0x4b   :  { %v3265_v58 = vcombine.low %v108_v45, %v120_v46  ;;  %v3240_v59 = vcombine.high %v83_v48, %v95_v49  ;;  %v3780_v28 = vld [vmem:[#allocation8 + $0x30] sm:$0xff]   ;;  %v3782_v29 = vld [vmem:[#allocation8 + $0x68] sm:$0xff]   ;;  %v3787_v35 = vld [vmem:[#allocation8 + $0xe0] sm:$0xff]  }
  0x4c   :  { %v3784_v31 = vld [vmem:[#allocation8 + $0x28] sm:$0xff]   ;;  %v3789_v37 = vld [vmem:[#allocation8 + $0xa0] sm:$0xff]   ;;  %v3790_v38 = vld [vmem:[#allocation8 + $0x58] sm:$0xff]  }
  0x4d   :  { %734 = vmatpush1.bf16.msra.mxu0 %v3227_v53  ;;  %775 = vmatpush1.bf16.msra.mxu1 %v3229_v54  ;;  %v96_v53 = vld [vmem:[#allocation5 + $0xa8] sm:$0xff]  ;;  %v3266_v54 = vcombine.high %v108_v45, %v120_v46  ;;  %v3798_v45 = vld [vmem:[#allocation8 + $0x48] sm:$0xff]  }
  0x4e   :  { %811 = vmatprep.subr.bf16.mxu0 %v3280_v55  ;;  %852 = vmatprep.subr.bf16.mxu1 %v3282_v56  ;;  %v3263_v55 = vcombine.low %v107_v40, %v119_v43  ;;  %v133_v56 = vld [vmem:[#allocation5 + $0x1d0] sm:$0xff]  ;;  %v3242_v62 = vcombine.high %v84_v52, %v96_v53  ;;  %v3796_v43 = vld [vmem:[#allocation8 + $0x10] sm:$0xff]   ;;  %v3799_v46 = vld [vmem:[#allocation8 + $0xc8] sm:$0xff]  }
  0x4f   :  { %v3292_v4 = vcombine.high %v133_v56, %v145_v57  ;;  %v3793_v40 = vld [vmem:[#allocation8 + $0x98] sm:$0xff]  }
  0x50   :  { %3297 = vmatmul.mubr.msk.bf16.vlgmr.msra.gmra.mxu0 %vm633_vm0, %v4132_v34  ;;  %3298 = vmatmul.mubr.msk.bf16.vlgmr.msra.gmra.mxu1 %vm633_vm0, %v4132_v34 }
  0x51   :  { %812 = vmatpush1.bf16.msra.mxu0 %v3279_v61  ;;  %853 = vmatpush1.bf16.msra.mxu1 %v3281_v63  ;;  %v146_v61 = vld [vmem:[#allocation5 + $0x238] sm:$0xff]  ;;  %v3239_v63 = vcombine.low %v83_v48, %v95_v49  ;;  %v3801_v48 = vld [vmem:[#allocation8 + $0x88] sm:$0xff]  }
  0x52   :  { %813 = vmatprep.subr.bf16.mxu0 %v3256_v1  ;;  %854 = vmatprep.subr.bf16.mxu1 %v3258_v3  ;;  %v109_v1 = vld [vmem:[#allocation5 + $0x110] sm:$0xff]  ;;  %v3241_v3 = vcombine.low %v84_v52, %v96_v53  ;;  %v3294_v7 = vcombine.high %v134_v60, %v146_v61  ;;  %v3802_v49 = vld [vmem:[#allocation8 + $0x40] sm:$0xff]  }
  0x53   :  { %833 = vmatprep.mubr.bf16.mxu0 %v4086_v0  ;;  %874 = vmatprep.mubr.bf16.mxu1 %v4086_v0  ;;  %v3268_v12 = vcombine.high %v109_v1, %v121_v2  ;;  %v3805_v52 = vld [vmem:[#allocation8 + $0x80] sm:$0xff]   ;;  %v3806_v53 = vld [vmem:[#allocation8 + $0x178] sm:$0xff]  }
  0x55   :  { %814 = vmatpush1.bf16.msra.mxu0 %v3255_v6  ;;  %855 = vmatpush1.bf16.msra.mxu1 %v3257_v8  ;;  %v122_v6 = vld [vmem:[#allocation5 + $0x178] sm:$0xff]  ;;  %v3291_v8 = vcombine.low %v133_v56, %v145_v57  ;;  %v4170_v57 = vld [vmem:[#allocation7] sm:$0xff] }
  0x56   :  { %815 = vmatprep.subr.bf16.mxu0 %v3232_v9  ;;  %856 = vmatprep.subr.bf16.mxu1 %v3234_v11  ;;  %v85_v9 = vld [vmem:[#allocation5 + $0x50] sm:$0xff]  ;;  %v3293_v11 = vcombine.low %v134_v60, %v146_v61  ;;  %v3270_v15 = vcombine.high %v110_v5, %v122_v6 }
  0x57   :  { %v3244_v18 = vcombine.high %v85_v9, %v97_v10  ;;  %v3243_v21 = vcombine.low %v85_v9, %v97_v10 }
  0x59   :  { %816 = vmatpush1.bf16.msra.mxu0 %v3231_v14  ;;  %857 = vmatpush1.bf16.msra.mxu1 %v3233_v16  ;;  %v98_v14 = vld [vmem:[#allocation5 + $0xb8] sm:$0xff]  ;;  %v3267_v16 = vcombine.low %v109_v1, %v121_v2 }
  0x5a   :  { %893 = vmatprep.subr.bf16.mxu0 %v3284_v17  ;;  %934 = vmatprep.subr.bf16.mxu1 %v3286_v19  ;;  %v3269_v17 = vcombine.low %v110_v5, %v122_v6  ;;  %v3246_v19 = vcombine.high %v86_v13, %v98_v14  ;;  %v3245_v23 = vcombine.low %v86_v13, %v98_v14 }
  0x5c   :  { %3299 = vmatmul.mubr.msk.bf16.vlgmr.msra.gmra.mxu0 %vm633_vm0, %v4132_v34  ;;  %3300 = vmatmul.mubr.msk.bf16.vlgmr.msra.gmra.mxu1 %vm633_vm0, %v4132_v34 }
  0x5d   :  { %894 = vmatpush1.bf16.msra.mxu0 %v3283_v22  ;;  %935 = vmatpush1.bf16.msra.mxu1 %v3285_v24  ;;  %v3775_v22 = vld [vmem:[#allocation8 + $0xf8] sm:$0xff]  }
  0x5e   :  { %895 = vmatprep.subr.bf16.mxu0 %v3260_v25  ;;  %936 = vmatprep.subr.bf16.mxu1 %v3262_v27  ;;  %v3776_v24 = vld [vmem:[#allocation8 + $0x38] sm:$0xff]   ;;  %v3779_v27 = vld [vmem:[#allocation8 + $0xf0] sm:$0xff]  }
  0x5f   :  { %915 = vmatprep.mubr.bf16.mxu0 %v4086_v0  ;;  %956 = vmatprep.mubr.bf16.mxu1 %v4086_v0  ;;  %v3777_v25 = vld [vmem:[#allocation8 + $0xb8] sm:$0xff]  }
  0x61   :  { %896 = vmatpush1.bf16.msra.mxu0 %v3259_v30  ;;  %937 = vmatpush1.bf16.msra.mxu1 %v3261_v32  ;;  %v3783_v30 = vld [vmem:[#allocation8 + $0xe8] sm:$0xff]  }
  0x62   :  { %897 = vmatprep.subr.bf16.mxu0 %v3236_v33  ;;  %938 = vmatprep.subr.bf16.mxu1 %v3238_v36  ;;  %v3785_v32 = vld [vmem:[#allocation8 + $0xa8] sm:$0xff]   ;;  %v3786_v33 = vld [vmem:[#allocation8 + $0x60] sm:$0xff]  }
  0x63   :  { %v3788_v36 = vld [vmem:[#allocation8 + $0x20] sm:$0xff]  }
  0x65   :  { %898 = vmatpush1.bf16.msra.mxu0 %v3235_v39  ;;  %939 = vmatpush1.bf16.msra.mxu1 %v3237_v41  ;;  %v3791_v39 = vld [vmem:[#allocation8 + $0xd8] sm:$0xff]   ;;  %v3794_v41 = vld [vmem:[#allocation8 + $0x50] sm:$0xff]  }
  0x66   :  { %975 = vmatprep.subr.bf16.mxu0 %v3288_v42  ;;  %1016 = vmatprep.subr.bf16.mxu1 %v3290_v44  ;;  %v3795_v42 = vld [vmem:[#allocation8 + $0xd0] sm:$0xff]  }
  0x67   :  { %v3797_v44 = vld [vmem:[#allocation8 + $0x90] sm:$0xff]  }
  0x68   :  { %3301 = vmatmul.mubr.msk.bf16.vlgmr.msra.gmra.mxu0 %vm633_vm0, %v4132_v34  ;;  %3302 = vmatmul.mubr.msk.bf16.vlgmr.msra.gmra.mxu1 %vm633_vm0, %v4132_v34 }
  0x69   :  { %976 = vmatpush1.bf16.msra.mxu0 %v3287_v47  ;;  %1017 = vmatpush1.bf16.msra.mxu1 %v3289_v50  ;;  %v3800_v47 = vld [vmem:[#allocation8 + $0x8] sm:$0xff]   ;;  %v3803_v50 = vld [vmem:[#allocation8 + $0xc0] sm:$0xff]  }
  0x6a   :  { %977 = vmatprep.subr.bf16.mxu0 %v3264_v51  ;;  %1018 = vmatprep.subr.bf16.mxu1 %v3266_v54  ;;  %v3804_v51 = vld [vmem:[#allocation8] sm:$0xff]   ;;  %v3807_v54 = vld [vmem:[#allocation8 + $0x1f8] sm:$0xff]  }
  0x6b   :  { %997 = vmatprep.mubr.bf16.mxu0 %v4086_v0  ;;  %1038 = vmatprep.mubr.bf16.mxu1 %v4086_v0 }
  0x6d   :  { %978 = vmatpush1.bf16.msra.mxu0 %v3263_v55  ;;  %1019 = vmatpush1.bf16.msra.mxu1 %v3265_v58  ;;  %v153_v55 = vlaneseq }
  0x6e   :  { %979 = vmatprep.subr.bf16.mxu0 %v3240_v59  ;;  %1020 = vmatprep.subr.bf16.mxu1 %v3242_v62 }
  0x6f   :  { %v4168_v56 = vshrl.u32 %v153_v55, 7  ;;  %v3823_v55 = vld [vmem:[#allocation8 + $0x1d8] sm:$0xff]  }
  0x71   :  { %980 = vmatpush1.bf16.msra.mxu0 %v3239_v63  ;;  %1021 = vmatpush1.bf16.msra.mxu1 %v3241_v3  ;;  %v4173_v58 = vsub.s32 0, %v4168_v56  ;;  %v4176_v59 = vsub.s32 2, %v4168_v56  ;;  %v4179_v60 = vsub.s32 1, %v4168_v56  ;;  %v4182_v61 = vsub.s32 3, %v4168_v56 }
  0x72   :  { %1057 = vmatprep.subr.bf16.mxu0 %v3292_v4  ;;  %1098 = vmatprep.subr.bf16.mxu1 %v3294_v7 }
  0x73   :  { %v156_v62 = vrot.slane %v4170_v57, %v4173_v58  ;;  %v164_v63 = vrot.slane %v4170_v57, %v4176_v59  ;;  %v160_v1 = vrot.slane %v4170_v57, %v4179_v60  ;;  %v168_v3 = vrot.slane %v4170_v57, %v4182_v61 }
  0x74   :  { %3303 = vmatmul.mubr.msk.bf16.vlgmr.msra.gmra.mxu0 %vm633_vm0, %v4132_v34  ;;  %3304 = vmatmul.mubr.msk.bf16.vlgmr.msra.gmra.mxu1 %vm633_vm0, %v4132_v34 }
  0x75   :  { %1058 = vmatpush1.bf16.msra.mxu0 %v3291_v8  ;;  %1099 = vmatpush1.bf16.msra.mxu1 %v3293_v11 }
  0x76   :  { %1059 = vmatprep.subr.bf16.mxu0 %v3268_v12  ;;  %1100 = vmatprep.subr.bf16.mxu1 %v3270_v15 }
  0x77   :  { %1079 = vmatprep.mubr.bf16.mxu0 %v4086_v0  ;;  %1120 = vmatprep.mubr.bf16.mxu1 %v4086_v0  ;;  %v3781_v0 = vld [vmem:[#allocation8 + $0xb0] sm:$0xff]  }
  0x79   :  { %1060 = vmatpush1.bf16.msra.mxu0 %v3267_v16  ;;  %1101 = vmatpush1.bf16.msra.mxu1 %v3269_v17 }
  0x7a   :  { %1061 = vmatprep.subr.bf16.mxu0 %v3244_v18  ;;  %1102 = vmatprep.subr.bf16.mxu1 %v3246_v19 }
  0x7d   :  { %1062 = vmatpush1.bf16.msra.mxu0 %v3243_v21  ;;  %1103 = vmatpush1.bf16.msra.mxu1 %v3245_v23  ;;  %v3808_v21 = vld [vmem:[#allocation8 + $0x138] sm:$0xff]  }
  0x7e   :  { %3500 = vmatprep.subr.bf16.mxu0 %v3774_v20  ;;  %3522 = vmatprep.subr.bf16.mxu1 %v3775_v22  ;;  %v4193_v22 = vsub.s32 5, %v4168_v56 }
  0x80   :  { %3305 = vmatmul.mubr.msk.bf16.vlgmr.msra.gmra.mxu0 %vm633_vm0, %v4132_v34  ;;  %3306 = vmatmul.mubr.msk.bf16.vlgmr.msra.gmra.mxu1 %vm633_vm0, %v4132_v34  ;;  %v3792_v34 = vld [vmem:[#allocation8 + $0x18] sm:$0xff]  }
  0x81   :  { %3501 = vmatpush3.bf16.msra.mxu0 %v3776_v24  ;;  %3523 = vmatpush3.bf16.msra.mxu1 %v3777_v25  ;;  %v3809_v25 = vld [vmem:[#allocation8 + $0x1b8] sm:$0xff]  }
  0x82   :  { %3502 = vmatprep.subr.bf16.mxu0 %v3778_v26  ;;  %3524 = vmatprep.subr.bf16.mxu1 %v3779_v27  ;;  %v3810_v26 = vld [vmem:[#allocation8 + $0x170] sm:$0xff]   ;;  %v4196_v27 = vsub.s32 7, %v4168_v56 }
  0x85   :  { %3503 = vmatpush3.bf16.msra.mxu0 %v3780_v28  ;;  %3525 = vmatpush3.bf16.msra.mxu1 %v3781_v0  ;;  %v3811_v28 = vld [vmem:[#allocation8 + $0x1f0] sm:$0xff]  }
  0x86   :  { %3504 = vmatprep.subr.bf16.mxu0 %v3782_v29  ;;  %3526 = vmatprep.subr.bf16.mxu1 %v3783_v30  ;;  %v3812_v0 = vld [vmem:[#allocation8 + $0x130] sm:$0xff]   ;;  %v176_v29 = vrot.slane %v4170_v57, %v4193_v22 }
  0x87   :  { %v3813_v30 = vld [vmem:[#allocation8 + $0x1b0] sm:$0xff]  }
  0x89   :  { %3505 = vmatpush3.bf16.msra.mxu0 %v3784_v31  ;;  %3527 = vmatpush3.bf16.msra.mxu1 %v3785_v32  ;;  %v3814_v31 = vld [vmem:[#allocation8 + $0x168] sm:$0xff]  }
  0x8a   :  { %3506 = vmatprep.subr.bf16.mxu0 %v3786_v33  ;;  %3528 = vmatprep.subr.bf16.mxu1 %v3787_v35  ;;  %v184_v33 = vrot.slane %v4170_v57, %v4196_v27  ;;  %v3815_v35 = vld [vmem:[#allocation8 + $0x1e8] sm:$0xff]  }
  0x8d   :  { %3507 = vmatpush3.bf16.msra.mxu0 %v3788_v36  ;;  %3529 = vmatpush3.bf16.msra.mxu1 %v3789_v37 }
  0x8e   :  { %3508 = vmatprep.subr.bf16.mxu0 %v3790_v38  ;;  %3530 = vmatprep.subr.bf16.mxu1 %v3791_v39  ;;  %v3816_v38 = vld [vmem:[#allocation8 + $0x128] sm:$0xff]  }
  0x91   :  { %3509 = vmatpush3.bf16.msra.mxu0 %v3792_v34  ;;  %3531 = vmatpush3.bf16.msra.mxu1 %v3793_v40  ;;  %v3817_v40 = vld [vmem:[#allocation8 + $0x1a8] sm:$0xff]  }
  0x92   :  { %3510 = vmatprep.subr.bf16.mxu0 %v3794_v41  ;;  %3532 = vmatprep.subr.bf16.mxu1 %v3795_v42  ;;  %v3818_v41 = vld [vmem:[#allocation8 + $0x160] sm:$0xff]  }
  0x95   :  { %3511 = vmatpush3.bf16.msra.mxu0 %v3796_v43  ;;  %3533 = vmatpush3.bf16.msra.mxu1 %v3797_v44  ;;  %v3819_v44 = vld [vmem:[#allocation8 + $0x1e0] sm:$0xff]  }
  0x96   :  { %3512 = vmatprep.subr.bf16.mxu0 %v3798_v45  ;;  %3534 = vmatprep.subr.bf16.mxu1 %v3799_v46 }
  0x99   :  { %3513 = vmatpush3.bf16.msra.mxu0 %v3800_v47  ;;  %3535 = vmatpush3.bf16.msra.mxu1 %v3801_v48 }
  0x9a   :  { %3514 = vmatprep.subr.bf16.mxu0 %v3802_v49  ;;  %3536 = vmatprep.subr.bf16.mxu1 %v3803_v50  ;;  %v3820_v49 = vld [vmem:[#allocation8 + $0x120] sm:$0xff]  }
  0x9d   :  { %3515 = vmatpush3.bf16.msra.mxu0 %v3804_v51  ;;  %3537 = vmatpush3.bf16.msra.mxu1 %v3805_v52  ;;  %v3821_v52 = vld [vmem:[#allocation8 + $0x1a0] sm:$0xff]  }
  0x9e   :  { %3544 = vmatprep.subr.bf16.mxu0 %v3806_v53  ;;  %3566 = vmatprep.subr.bf16.mxu1 %v3807_v54  ;;  %v3822_v53 = vld [vmem:[#allocation8 + $0x158] sm:$0xff]  }
 0x104   :  { %v671_v2 = vpop.f32.mrf.mxu0  ;;  %v712_v5 = vpop.f32.mrf.mxu1 }
 0x105   :  { %v672_v4 = vadd.f32 %v671_v2, %v156_v62  ;;  %v713_v6 = vadd.f32 %v712_v5, %v164_v63  ;;  %v3824_v62 = vld [vmem:[#allocation8 + $0x118] sm:$0xff]   ;;  %v4205_v63 = vsub.s32 6, %v4168_v56  ;;  %v3827_v5 = vld [vmem:[#allocation8 + $0x1d0] sm:$0xff]  }
 0x106   :  { %v673_v7 = vpop.f32.mrf.mxu0  ;;  %v714_v9 = vpop.f32.mrf.mxu1  ;;  %v3825_v2 = vld [vmem:[#allocation8 + $0x198] sm:$0xff]  }
 0x107   :  { %v674_v8 = vadd.f32 %v673_v7, %v160_v1  ;;  %v1129_v10 = vmax.f32 %v672_v4, 0.0  ;;  %v1131_v11 = vmax.f32 %v713_v6, 0.0  ;;  %v715_v12 = vadd.f32 %v714_v9, %v168_v3  ;;  %v3826_v3 = vld [vmem:[#allocation8 + $0x150] sm:$0xff]  }
 0x108   :  { %v675_v13 = vpop.f32.mrf.mxu0  ;;  %v716_v15 = vpop.f32.mrf.mxu1  ;;  %v4208_v1 = vsub.s32 4, %v4168_v56  ;;  %v4214_v7 = vld [vmem:[#allocation7 + $0x8] sm:$0xff]  ;;  %v180_v9 = vrot.slane %v4170_v57, %v4205_v63 }
 0x109   :  { %v1130_v14 = vmax.f32 %v674_v8, 0.0  ;;  %v1132_v16 = vmax.f32 %v715_v12, 0.0  ;;  %v1155_v18 = vpack.c.bf16 %v1131_v11, %v1131_v11  ;;  %v1153_v23 = vpack.c.bf16 %v1129_v10, %v1129_v10  ;;  %v3828_v10 = vld [vmem:[#allocation8 + $0x110] sm:$0xff]   ;;  %v3830_v13 = vld [vmem:[#allocation8 + $0x148] sm:$0xff]  }
 0x10a   :  { %v676_v17 = vpop.f32.mrf.mxu0  ;;  %v717_v20 = vpop.f32.mrf.mxu1  ;;  %v172_v56 = vrot.slane %v4170_v57, %v4208_v1  ;;  %v3829_v12 = vld [vmem:[#allocation8 + $0x190] sm:$0xff]   ;;  %v3831_v15 = vld [vmem:[#allocation8 + $0x1c8] sm:$0xff]  }
 0x10b   :  { %v1154_v19 = vpack.c.bf16 %v1130_v14, %v1130_v14  ;;  %v1156_v24 = vpack.c.bf16 %v1132_v16, %v1132_v16  ;;  %v192_v16 = vrot.slane %v4214_v7, %v4179_v60 }
 0x10d   :  { %2752 = vmatprep.mubr.bf16.mxu0 %v1154_v19  ;;  %2792 = vmatprep.mubr.bf16.mxu1 %v1156_v24  ;;  %v3833_v24 = vld [vmem:[#allocation8 + $0x188] sm:$0xff]  }
 0x10e   :  { %2753 = vmatmul.mubr.bf16.vlgmr.msra.gmra.mxu0 %v1153_v23  ;;  %2793 = vmatmul.mubr.bf16.vlgmr.msra.gmra.mxu1 %v1155_v18  ;;  %v200_v18 = vrot.slane %v4214_v7, %v4182_v61 }
 0x10f   :  { %3545 = vmatpush3.bf16.msra.mxu0 %v3808_v21  ;;  %3567 = vmatpush3.bf16.msra.mxu1 %v3809_v25  ;;  %v3832_v21 = vld [vmem:[#allocation8 + $0x108] sm:$0xff]   ;;  %v3834_v25 = vld [vmem:[#allocation8 + $0x140] sm:$0xff]  }
 0x110   :  { %3546 = vmatprep.subr.bf16.mxu0 %v3810_v26  ;;  %v4200_v32 = vpop.f32.mrf.mxu0  ;;  %3568 = vmatprep.subr.bf16.mxu1 %v3811_v28  ;;  %v794_v36 = vpop.f32.mrf.mxu1  ;;  %v3835_v26 = vld [vmem:[#allocation8 + $0x1c0] sm:$0xff]  }
 0x111   :  { %v795_v20 = vadd.f32 %v794_v36, %v180_v9  ;;  %v754_v57 = vadd.f32 %v4200_v32, %v172_v56  ;;  %v3839_v32 = vld [vmem:[#allocation8 + $0x2f8] sm:$0xff]   ;;  %v3851_v9 = vld [vmem:[#allocation8 + $0x2e0] sm:$0xff]  }
 0x112   :  { %v755_v37 = vpop.f32.mrf.mxu0  ;;  %v796_v34 = vpop.f32.mrf.mxu1  ;;  %v3852_v56 = vld [vmem:[#allocation8 + $0x220] sm:$0xff]  }
 0x113   :  { %3547 = vmatpush3.bf16.msra.mxu0 %v3812_v0  ;;  %v756_v39 = vadd.f32 %v755_v37, %v176_v29  ;;  %3569 = vmatpush3.bf16.msra.mxu1 %v3813_v30  ;;  %v797_v43 = vadd.f32 %v796_v34, %v184_v33  ;;  %v1135_v29 = vmax.f32 %v795_v20, 0.0  ;;  %v3836_v30 = vld [vmem:[#allocation8 + $0x100] sm:$0xff]  }
 0x114   :  { %3548 = vmatprep.subr.bf16.mxu0 %v3814_v31  ;;  %v757_v42 = vpop.f32.mrf.mxu0  ;;  %3570 = vmatprep.subr.bf16.mxu1 %v3815_v35  ;;  %v798_v46 = vpop.f32.mrf.mxu1  ;;  %v1133_v31 = vmax.f32 %v754_v57, 0.0  ;;  %v3837_v33 = vld [vmem:[#allocation8 + $0x180] sm:$0xff]   ;;  %v3838_v35 = vld [vmem:[#allocation8 + $0x278] sm:$0xff]   ;;  %v3859_v57 = vld [vmem:[#allocation8 + $0x2d0] sm:$0xff]  }
 0x115   :  { %v1134_v45 = vmax.f32 %v756_v39, 0.0  ;;  %v1136_v47 = vmax.f32 %v797_v43, 0.0 }
 0x116   :  { %v758_v48 = vpop.f32.mrf.mxu0  ;;  %v799_v51 = vpop.f32.mrf.mxu1  ;;  %v1157_v43 = vpack.c.bf16 %v1133_v31, %v1133_v31  ;;  %v208_v31 = vrot.slane %v4214_v7, %v4193_v22 }
 0x117   :  { %3549 = vmatpush3.bf16.msra.mxu0 %v3816_v38  ;;  %v1158_v50 = vpack.c.bf16 %v1134_v45, %v1134_v45  ;;  %3571 = vmatpush3.bf16.msra.mxu1 %v3817_v40  ;;  %v1160_v54 = vpack.c.bf16 %v1136_v47, %v1136_v47  ;;  %v1159_v40 = vpack.c.bf16 %v1135_v29, %v1135_v29  ;;  %v3842_v45 = vld [vmem:[#allocation8 + $0x270] sm:$0xff]  }
 0x118   :  { %3550 = vmatprep.subr.bf16.mxu0 %v3818_v41  ;;  %3572 = vmatprep.subr.bf16.mxu1 %v3819_v44  ;;  %v3840_v41 = vld [vmem:[#allocation8 + $0x238] sm:$0xff]   ;;  %v3843_v47 = vld [vmem:[#allocation8 + $0x2f0] sm:$0xff]  }
 0x119   :  { %2832 = vmatprep.mubr.bf16.mxu0 %v1158_v50  ;;  %2872 = vmatprep.mubr.bf16.mxu1 %v1160_v54  ;;  %v3841_v44 = vld [vmem:[#allocation8 + $0x2b8] sm:$0xff]   ;;  %v3845_v54 = vld [vmem:[#allocation8 + $0x2b0] sm:$0xff]  }
 0x11b   :  { %3551 = vmatpush3.bf16.msra.mxu0 %v3820_v49  ;;  %3573 = vmatpush3.bf16.msra.mxu1 %v3821_v52  ;;  %v3844_v52 = vld [vmem:[#allocation8 + $0x230] sm:$0xff]  }
 0x11c   :  { %3552 = vmatprep.subr.bf16.mxu0 %v3822_v53  ;;  %v4210_v4 = vpop.f32.mrf.mxu0  ;;  %3574 = vmatprep.subr.bf16.mxu1 %v3823_v55  ;;  %v4212_v6 = vpop.f32.mrf.mxu1  ;;  %v3846_v55 = vld [vmem:[#allocation8 + $0x268] sm:$0xff]  }
 0x11e   :  { %v837_v8 = vpop.f32.mrf.mxu0  ;;  %v878_v11 = vpop.f32.mrf.mxu1 }
 0x11f   :  { %3553 = vmatpush3.bf16.msra.mxu0 %v3824_v62  ;;  %3575 = vmatpush3.bf16.msra.mxu1 %v3825_v2  ;;  %v838_v28 = vadd.f32 %v837_v8, %v192_v16  ;;  %v879_v0 = vadd.f32 %v878_v11, %v200_v18  ;;  %v3847_v62 = vld [vmem:[#allocation8 + $0x2e8] sm:$0xff]   ;;  %v3855_v16 = vld [vmem:[#allocation8 + $0x2d8] sm:$0xff]  }
 0x120   :  { %3554 = vmatprep.subr.bf16.mxu0 %v3826_v3  ;;  %v839_v14 = vpop.f32.mrf.mxu0  ;;  %3576 = vmatprep.subr.bf16.mxu1 %v3827_v5  ;;  %v880_v17 = vpop.f32.mrf.mxu1  ;;  %v3848_v2 = vld [vmem:[#allocation8 + $0x228] sm:$0xff]   ;;  %v3850_v5 = vld [vmem:[#allocation8 + $0x260] sm:$0xff]  }
 0x121   :  { %v1138_v37 = vmax.f32 %v838_v28, 0.0  ;;  %v1140_v39 = vmax.f32 %v879_v0, 0.0  ;;  %v3849_v3 = vld [vmem:[#allocation8 + $0x2a8] sm:$0xff]   ;;  %v3854_v14 = vld [vmem:[#allocation8 + $0x258] sm:$0xff]   ;;  %v3861_v28 = vld [vmem:[#allocation8 + $0x290] sm:$0xff]  }
 0x122   :  { %v840_v19 = vpop.f32.mrf.mxu0  ;;  %v881_v23 = vpop.f32.mrf.mxu1  ;;  %v3862_v0 = vld [vmem:[#allocation8 + $0x248] sm:$0xff]  }
 0x123   :  { %3555 = vmatpush3.bf16.msra.mxu0 %v3828_v10  ;;  %3577 = vmatpush3.bf16.msra.mxu1 %v3829_v12  ;;  %v1162_v48 = vpack.c.bf16 %v1138_v37, %v1138_v37  ;;  %v1164_v50 = vpack.c.bf16 %v1140_v39, %v1140_v39  ;;  %v3856_v19 = vld [vmem:[#allocation8 + $0x218] sm:$0xff]   ;;  %v3858_v23 = vld [vmem:[#allocation8 + $0x250] sm:$0xff]   ;;  %v3864_v39 = vld [vmem:[#allocation8 + $0x208] sm:$0xff]  }
 0x124   :  { %3556 = vmatprep.subr.bf16.mxu0 %v3830_v13  ;;  %3578 = vmatprep.subr.bf16.mxu1 %v3831_v15  ;;  %v3853_v13 = vld [vmem:[#allocation8 + $0x2a0] sm:$0xff]  }
 0x127   :  { %3557 = vmatpush3.bf16.msra.mxu0 %v3832_v21  ;;  %3579 = vmatpush3.bf16.msra.mxu1 %v3833_v24  ;;  %v3857_v21 = vld [vmem:[#allocation8 + $0x298] sm:$0xff]   ;;  %v196_v24 = vrot.slane %v4214_v7, %v4176_v59 }
 0x128   :  { %3558 = vmatprep.subr.bf16.mxu0 %v3834_v25  ;;  %v4225_v36 = vpop.f32.mrf.mxu0  ;;  %3580 = vmatprep.subr.bf16.mxu1 %v3835_v26  ;;  %v4227_v38 = vpop.f32.mrf.mxu1  ;;  %v3860_v25 = vld [vmem:[#allocation8 + $0x210] sm:$0xff]   ;;  %v188_v26 = vrot.slane %v4214_v7, %v4173_v58 }
 0x129   :  { %v877_v37 = vadd.f32 %v4212_v6, %v196_v24  ;;  %v3885_v24 = vld [vmem:[#allocation8 + $0x3a0] sm:$0xff]  }
 0x12a   :  { %v4229_v34 = vpop.f32.mrf.mxu0  ;;  %v4231_v42 = vpop.f32.mrf.mxu1 }
 0x12b   :  { %3559 = vmatpush3.bf16.msra.mxu0 %v3836_v30  ;;  %3581 = vmatpush3.bf16.msra.mxu1 %v3837_v33  ;;  %v3863_v30 = vld [vmem:[#allocation8 + $0x2c8] sm:$0xff]   ;;  %v1139_v6 = vmax.f32 %v877_v37, 0.0  ;;  %v212_v37 = vrot.slane %v4214_v7, %v4205_v63 }
 0x12c   :  { %3588 = vmatprep.subr.bf16.mxu0 %v3838_v35  ;;  %v921_v46 = vpop.f32.mrf.mxu0  ;;  %3610 = vmatprep.subr.bf16.mxu1 %v3839_v32  ;;  %v962_v49 = vpop.f32.mrf.mxu1  ;;  %v216_v35 = vrot.slane %v4214_v7, %v4196_v27 }
 0x12d   :  { %v3867_v46 = vld [vmem:[#allocation8 + $0x2c0] sm:$0xff]  }
 0x12e   :  { %2833 = vmatmul.mubr.bf16.vlgmr.msra.gmra.mxu0 %v1157_v43  ;;  %v922_v51 = vpop.f32.mrf.mxu0  ;;  %2873 = vmatmul.mubr.bf16.vlgmr.msra.gmra.mxu1 %v1159_v40  ;;  %v963_v53 = vpop.f32.mrf.mxu1  ;;  %v3865_v43 = vld [vmem:[#allocation8 + $0x288] sm:$0xff]   ;;  %v961_v49 = vadd.f32 %v4231_v42, %v216_v35  ;;  %v3873_v42 = vld [vmem:[#allocation8 + $0x3b8] sm:$0xff]  }
 0x12f   :  { %3589 = vmatpush3.bf16.msra.mxu0 %v3840_v41  ;;  %3611 = vmatpush3.bf16.msra.mxu1 %v3841_v44  ;;  %v836_v41 = vadd.f32 %v4210_v4, %v188_v26  ;;  %v3866_v44 = vld [vmem:[#allocation8 + $0x240] sm:$0xff]   ;;  %v3887_v26 = vld [vmem:[#allocation8 + $0x3d8] sm:$0xff]  }
 0x130   :  { %3590 = vmatprep.subr.bf16.mxu0 %v3842_v45  ;;  %3612 = vmatprep.subr.bf16.mxu1 %v3843_v47  ;;  %v920_v47 = vadd.f32 %v4229_v34, %v208_v31  ;;  %v3868_v51 = vld [vmem:[#allocation8 + $0x200] sm:$0xff]   ;;  %v3872_v34 = vld [vmem:[#allocation8 + $0x338] sm:$0xff]   ;;  %v3891_v31 = vld [vmem:[#allocation8 + $0x3d0] sm:$0xff]  }
 0x131   :  { %2912 = vmatprep.mubr.bf16.mxu0 %v1162_v48  ;;  %2952 = vmatprep.mubr.bf16.mxu1 %v1164_v50  ;;  %v1137_v53 = vmax.f32 %v836_v41, 0.0  ;;  %v3869_v4 = vld [vmem:[#allocation8 + $0x280] sm:$0xff]   ;;  %v4261_v35 = vld [vmem:[#allocation7 + $0x10] sm:$0xff]  ;;  %v204_v41 = vrot.slane %v4214_v7, %v4208_v1  ;;  %v3897_v7 = vld [vmem:[#allocation8 + $0x388] sm:$0xff]  }
 0x133   :  { %3591 = vmatpush3.bf16.msra.mxu0 %v3844_v52  ;;  %3613 = vmatpush3.bf16.msra.mxu1 %v3845_v54  ;;  %v3870_v54 = vld [vmem:[#allocation8 + $0x378] sm:$0xff]  }
 0x134   :  { %3592 = vmatprep.subr.bf16.mxu0 %v3846_v55  ;;  %v4233_v8 = vpop.f32.mrf.mxu0  ;;  %3614 = vmatprep.subr.bf16.mxu1 %v3847_v62  ;;  %v4235_v10 = vpop.f32.mrf.mxu1  ;;  %v3871_v55 = vld [vmem:[#allocation8 + $0x3f8] sm:$0xff]   ;;  %v1142_v62 = vmax.f32 %v920_v47, 0.0  ;;  %v232_v47 = vrot.slane %v4261_v35, %v4182_v61 }
 0x136   :  { %v4237_v11 = vpop.f32.mrf.mxu0  ;;  %v4239_v12 = vpop.f32.mrf.mxu1 }
 0x137   :  { %3593 = vmatpush3.bf16.msra.mxu0 %v3848_v2  ;;  %3615 = vmatpush3.bf16.msra.mxu1 %v3849_v3  ;;  %v1144_v2 = vmax.f32 %v961_v49, 0.0  ;;  %v1163_v3 = vpack.c.bf16 %v1139_v6, %v1139_v6  ;;  %v3896_v49 = vld [vmem:[#allocation8 + $0x308] sm:$0xff]   ;;  %v3898_v6 = vld [vmem:[#allocation8 + $0x340] sm:$0xff]  }
 0x138   :  { %3594 = vmatprep.subr.bf16.mxu0 %v3850_v5  ;;  %v1003_v15 = vpop.f32.mrf.mxu0  ;;  %3616 = vmatprep.subr.bf16.mxu1 %v3851_v9  ;;  %v1044_v17 = vpop.f32.mrf.mxu1  ;;  %v1161_v5 = vpack.c.bf16 %v1137_v53, %v1137_v53  ;;  %v3874_v9 = vld [vmem:[#allocation8 + $0x370] sm:$0xff]   ;;  %v1043_v53 = vadd.f32 %v4239_v12, %v232_v47  ;;  %v3930_v47 = vld [vmem:[#allocation8 + $0x440] sm:$0xff]  }
 0x139   :  { %v3876_v15 = vld [vmem:[#allocation8 + $0x330] sm:$0xff]   ;;  %v3878_v17 = vld [vmem:[#allocation8 + $0x368] sm:$0xff]  }
 0x13a   :  { %v1004_v18 = vpop.f32.mrf.mxu0  ;;  %v1045_v20 = vpop.f32.mrf.mxu1  ;;  %v3906_v12 = vld [vmem:[#allocation8 + $0x470] sm:$0xff]  }
 0x13b   :  { %3595 = vmatpush3.bf16.msra.mxu0 %v3852_v56  ;;  %3617 = vmatpush3.bf16.msra.mxu1 %v3853_v13  ;;  %v3875_v56 = vld [vmem:[#allocation8 + $0x3f0] sm:$0xff]   ;;  %v1166_v13 = vpack.c.bf16 %v1142_v62, %v1142_v62  ;;  %v3879_v18 = vld [vmem:[#allocation8 + $0x3e8] sm:$0xff]   ;;  %v1148_v62 = vmax.f32 %v1043_v53, 0.0 }
 0x13c   :  { %3596 = vmatprep.subr.bf16.mxu0 %v3854_v14  ;;  %3618 = vmatprep.subr.bf16.mxu1 %v3855_v16  ;;  %v1168_v14 = vpack.c.bf16 %v1144_v2, %v1144_v2  ;;  %v3877_v16 = vld [vmem:[#allocation8 + $0x3b0] sm:$0xff]   ;;  %v3881_v20 = vld [vmem:[#allocation8 + $0x3a8] sm:$0xff]  }
 0x13f   :  { %3597 = vmatpush3.bf16.msra.mxu0 %v3856_v19  ;;  %3619 = vmatpush3.bf16.msra.mxu1 %v3857_v21  ;;  %v3880_v19 = vld [vmem:[#allocation8 + $0x328] sm:$0xff]   ;;  %v3882_v21 = vld [vmem:[#allocation8 + $0x360] sm:$0xff]  }
 0x140   :  { %3598 = vmatprep.subr.bf16.mxu0 %v3858_v23  ;;  %v4245_v29 = vpop.f32.mrf.mxu0  ;;  %3620 = vmatprep.subr.bf16.mxu1 %v3859_v57  ;;  %v4249_v33 = vpop.f32.mrf.mxu1  ;;  %v3883_v23 = vld [vmem:[#allocation8 + $0x3e0] sm:$0xff]  }
 0x141   :  { %v3884_v57 = vld [vmem:[#allocation8 + $0x320] sm:$0xff]  }
 0x142   :  { %v4253_v32 = vpop.f32.mrf.mxu0  ;;  %v4256_v40 = vpop.f32.mrf.mxu1 }
 0x143   :  { %3599 = vmatpush3.bf16.msra.mxu0 %v3860_v25  ;;  %3621 = vmatpush3.bf16.msra.mxu1 %v3861_v28  ;;  %v3886_v25 = vld [vmem:[#allocation8 + $0x358] sm:$0xff]  }
 0x144   :  { %3600 = vmatprep.subr.bf16.mxu0 %v3862_v0  ;;  %v1085_v45 = vpop.f32.mrf.mxu0  ;;  %3622 = vmatprep.subr.bf16.mxu1 %v3863_v30  ;;  %v1126_v48 = vpop.f32.mrf.mxu1  ;;  %v3888_v28 = vld [vmem:[#allocation8 + $0x318] sm:$0xff]   ;;  %v3890_v30 = vld [vmem:[#allocation8 + $0x350] sm:$0xff]  }
 0x145   :  { %v3889_v0 = vld [vmem:[#allocation8 + $0x398] sm:$0xff]   ;;  %v3895_v45 = vld [vmem:[#allocation8 + $0x3c8] sm:$0xff]   ;;  %v959_v48 = vadd.f32 %v4227_v38, %v212_v37  ;;  %v3901_v38 = vld [vmem:[#allocation8 + $0x380] sm:$0xff]  }
 0x146   :  { %v1086_v50 = vpop.f32.mrf.mxu0  ;;  %v1127_v52 = vpop.f32.mrf.mxu1  ;;  %v3925_v37 = vld [vmem:[#allocation8 + $0x490] sm:$0xff]  }
 0x147   :  { %3601 = vmatpush3.bf16.msra.mxu0 %v3864_v39  ;;  %3623 = vmatpush3.bf16.msra.mxu1 %v3865_v43  ;;  %v3892_v39 = vld [vmem:[#allocation8 + $0x310] sm:$0xff]   ;;  %v918_v50 = vadd.f32 %v4225_v36, %v204_v41  ;;  %v3903_v36 = vld [vmem:[#allocation8 + $0x4f8] sm:$0xff]   ;;  %v3927_v41 = vld [vmem:[#allocation8 + $0x4c8] sm:$0xff]  }
 0x148   :  { %3602 = vmatprep.subr.bf16.mxu0 %v3866_v44  ;;  %3624 = vmatprep.subr.bf16.mxu1 %v3867_v46  ;;  %v3893_v43 = vld [vmem:[#allocation8 + $0x390] sm:$0xff]   ;;  %v3894_v44 = vld [vmem:[#allocation8 + $0x348] sm:$0xff]   ;;  %v224_v46 = vrot.slane %v4261_v35, %v4179_v60  ;;  %v1143_v60 = vmax.f32 %v959_v48, 0.0  ;;  %v3931_v48 = vld [vmem:[#allocation8 + $0x4c0] sm:$0xff]  }
 0x149   :  { %v1141_v61 = vmax.f32 %v918_v50, 0.0 }
 0x14a   :  { %v1002_v52 = vadd.f32 %v4237_v11, %v224_v46  ;;  %v1167_v2 = vpack.c.bf16 %v1143_v60, %v1143_v60  ;;  %v3905_v11 = vld [vmem:[#allocation8 + $0x4b8] sm:$0xff]  }
 0x14b   :  { %3603 = vmatpush3.bf16.msra.mxu0 %v3868_v51  ;;  %3625 = vmatpush3.bf16.msra.mxu1 %v3869_v4  ;;  %v3899_v51 = vld [vmem:[#allocation8 + $0x3c0] sm:$0xff]   ;;  %v3936_v60 = vld [vmem:[#allocation8 + $0x538] sm:$0xff]  }
 0x14c   :  { %3632 = vmatprep.subr.bf16.mxu0 %v3870_v54  ;;  %3654 = vmatprep.subr.bf16.mxu1 %v3871_v55  ;;  %v3900_v4 = vld [vmem:[#allocation8 + $0x300] sm:$0xff]   ;;  %v3902_v54 = vld [vmem:[#allocation8 + $0x478] sm:$0xff]   ;;  %v1146_v55 = vmax.f32 %v1002_v52, 0.0 }
 0x14e   :  { %2913 = vmatmul.mubr.bf16.vlgmr.msra.gmra.mxu0 %v1161_v5  ;;  %2953 = vmatmul.mubr.bf16.vlgmr.msra.gmra.mxu1 %v1163_v3  ;;  %v3904_v3 = vld [vmem:[#allocation8 + $0x438] sm:$0xff]   ;;  %v3907_v5 = vld [vmem:[#allocation8 + $0x4f0] sm:$0xff]  }
 0x14f   :  { %3633 = vmatpush3.bf16.msra.mxu0 %v3872_v34  ;;  %3655 = vmatpush3.bf16.msra.mxu1 %v3873_v42  ;;  %v1165_v34 = vpack.c.bf16 %v1141_v61, %v1141_v61  ;;  %v1170_v42 = vpack.c.bf16 %v1146_v55, %v1146_v55  ;;  %v3939_v61 = vld [vmem:[#allocation8 + $0x5f0] sm:$0xff]  }
 0x150   :  { %3634 = vmatprep.subr.bf16.mxu0 %v3874_v9  ;;  %3656 = vmatprep.subr.bf16.mxu1 %v3875_v56  ;;  %v1172_v9 = vpack.c.bf16 %v1148_v62, %v1148_v62  ;;  %v3908_v56 = vld [vmem:[#allocation8 + $0x430] sm:$0xff]   ;;  %v3942_v62 = vld [vmem:[#allocation8 + $0x568] sm:$0xff]  }
 0x151   :  { %2992 = vmatprep.mubr.bf16.mxu0 %v1166_v13  ;;  %3032 = vmatprep.mubr.bf16.mxu1 %v1168_v14  ;;  %v3909_v13 = vld [vmem:[#allocation8 + $0x4b0] sm:$0xff]   ;;  %v3910_v14 = vld [vmem:[#allocation8 + $0x468] sm:$0xff]  }
 0x152   :  { %v3941_v55 = vld [vmem:[#allocation8 + $0x5b0] sm:$0xff]  }
 0x153   :  { %3635 = vmatpush3.bf16.msra.mxu0 %v3876_v15  ;;  %3657 = vmatpush3.bf16.msra.mxu1 %v3877_v16  ;;  %v3911_v15 = vld [vmem:[#allocation8 + $0x4e8] sm:$0xff]  }
 0x154   :  { %3636 = vmatprep.subr.bf16.mxu0 %v3878_v17  ;;  %3658 = vmatprep.subr.bf16.mxu1 %v3879_v18  ;;  %v3912_v16 = vld [vmem:[#allocation8 + $0x428] sm:$0xff]   ;;  %v3914_v18 = vld [vmem:[#allocation8 + $0x460] sm:$0xff]  }
 0x155   :  { %v3913_v17 = vld [vmem:[#allocation8 + $0x4a8] sm:$0xff]  }
 0x157   :  { %3637 = vmatpush3.bf16.msra.mxu0 %v3880_v19  ;;  %3659 = vmatpush3.bf16.msra.mxu1 %v3881_v20  ;;  %v3915_v19 = vld [vmem:[#allocation8 + $0x4e0] sm:$0xff]  }
 0x158   :  { %3638 = vmatprep.subr.bf16.mxu0 %v3882_v21  ;;  %3660 = vmatprep.subr.bf16.mxu1 %v3883_v23  ;;  %v3916_v20 = vld [vmem:[#allocation8 + $0x420] sm:$0xff]   ;;  %v3918_v23 = vld [vmem:[#allocation8 + $0x458] sm:$0xff]  }
 0x159   :  { %v3917_v21 = vld [vmem:[#allocation8 + $0x4a0] sm:$0xff]  }
 0x15b   :  { %3639 = vmatpush3.bf16.msra.mxu0 %v3884_v57  ;;  %3661 = vmatpush3.bf16.msra.mxu1 %v3885_v24  ;;  %v3919_v57 = vld [vmem:[#allocation8 + $0x4d8] sm:$0xff]  }
 0x15c   :  { %3640 = vmatprep.subr.bf16.mxu0 %v3886_v25  ;;  %3662 = vmatprep.subr.bf16.mxu1 %v3887_v26  ;;  %v3920_v24 = vld [vmem:[#allocation8 + $0x418] sm:$0xff]   ;;  %v3922_v26 = vld [vmem:[#allocation8 + $0x450] sm:$0xff]  }
 0x15d   :  { %v3921_v25 = vld [vmem:[#allocation8 + $0x498] sm:$0xff]  }
 0x15f   :  { %3641 = vmatpush3.bf16.msra.mxu0 %v3888_v28  ;;  %3663 = vmatpush3.bf16.msra.mxu1 %v3889_v0  ;;  %v3923_v28 = vld [vmem:[#allocation8 + $0x4d0] sm:$0xff]   ;;  %v228_v0 = vrot.slane %v4261_v35, %v4176_v59  ;;  %v3928_v59 = vld [vmem:[#allocation8 + $0x408] sm:$0xff]  }
 0x160   :  { %3642 = vmatprep.subr.bf16.mxu0 %v3890_v30  ;;  %3664 = vmatprep.subr.bf16.mxu1 %v3891_v31  ;;  %v3924_v30 = vld [vmem:[#allocation8 + $0x410] sm:$0xff]   ;;  %v220_v31 = vrot.slane %v4261_v35, %v4173_v58  ;;  %v3929_v58 = vld [vmem:[#allocation8 + $0x488] sm:$0xff]  }
 0x162   :  { %v1000_v46 = vadd.f32 %v4233_v8, %v220_v31  ;;  %v3935_v8 = vld [vmem:[#allocation8 + $0x5f8] sm:$0xff]  }
 0x163   :  { %3643 = vmatpush3.bf16.msra.mxu0 %v3892_v39  ;;  %3665 = vmatpush3.bf16.msra.mxu1 %v3893_v43  ;;  %v3926_v39 = vld [vmem:[#allocation8 + $0x448] sm:$0xff]   ;;  %v240_v43 = vrot.slane %v4261_v35, %v4193_v22 }
 0x164   :  { %3644 = vmatprep.subr.bf16.mxu0 %v3894_v44  ;;  %3666 = vmatprep.subr.bf16.mxu1 %v3895_v45  ;;  %v248_v44 = vrot.slane %v4261_v35, %v4196_v27  ;;  %v1041_v45 = vadd.f32 %v4235_v10, %v228_v0  ;;  %v1145_v27 = vmax.f32 %v1000_v46, 0.0  ;;  %v3933_v10 = vld [vmem:[#allocation8 + $0x480] sm:$0xff]  }
 0x166   :  { %v1125_v50 = vadd.f32 %v4256_v40, %v248_v44  ;;  %v1147_v22 = vmax.f32 %v1041_v45, 0.0  ;;  %v3938_v40 = vld [vmem:[#allocation8 + $0x570] sm:$0xff]  }
 0x167   :  { %3645 = vmatpush3.bf16.msra.mxu0 %v3896_v49  ;;  %3667 = vmatpush3.bf16.msra.mxu1 %v3897_v7  ;;  %v1084_v49 = vadd.f32 %v4253_v32, %v240_v43  ;;  %v3932_v7 = vld [vmem:[#allocation8 + $0x400] sm:$0xff]   ;;  %v3937_v32 = vld [vmem:[#allocation8 + $0x5b8] sm:$0xff]  }
 0x168   :  { %3646 = vmatprep.subr.bf16.mxu0 %v3898_v6  ;;  %3668 = vmatprep.subr.bf16.mxu1 %v3899_v51  ;;  %v3934_v6 = vld [vmem:[#allocation8 + $0x578] sm:$0xff]   ;;  %v1152_v52 = vmax.f32 %v1125_v50, 0.0  ;;  %v1171_v53 = vpack.c.bf16 %v1147_v22, %v1147_v22 }
 0x169   :  { %v1150_v51 = vmax.f32 %v1084_v49, 0.0 }
 0x16b   :  { %3647 = vmatpush3.bf16.msra.mxu0 %v3900_v4  ;;  %3669 = vmatpush3.bf16.msra.mxu1 %v3901_v38  ;;  %v1169_v4 = vpack.c.bf16 %v1145_v27, %v1145_v27  ;;  %v1174_v38 = vpack.c.bf16 %v1150_v51, %v1150_v51 }
 0x16c   :  { %3676 = vmatprep.subr.bf16.mxu0 %v3902_v54  ;;  %3698 = vmatprep.subr.bf16.mxu1 %v3903_v36  ;;  %v1176_v54 = vpack.c.bf16 %v1152_v52, %v1152_v52  ;;  %v3940_v36 = vld [vmem:[#allocation8 + $0x530] sm:$0xff]  }
 0x16e   :  { %2993 = vmatmul.mubr.bf16.vlgmr.msra.gmra.mxu0 %v1165_v34  ;;  %3033 = vmatmul.mubr.bf16.vlgmr.msra.gmra.mxu1 %v1167_v2  ;;  %v3943_v2 = vld [vmem:[#allocation8 + $0x5e8] sm:$0xff]  }
 0x16f   :  { %3677 = vmatpush3.bf16.msra.mxu0 %v3904_v3  ;;  %3699 = vmatpush3.bf16.msra.mxu1 %v3905_v11  ;;  %v3944_v3 = vld [vmem:[#allocation8 + $0x528] sm:$0xff]   ;;  %v3946_v11 = vld [vmem:[#allocation8 + $0x560] sm:$0xff]  }
 0x170   :  { %3678 = vmatprep.subr.bf16.mxu0 %v3906_v12  ;;  %3700 = vmatprep.subr.bf16.mxu1 %v3907_v5  ;;  %v3945_v34 = vld [vmem:[#allocation8 + $0x5a8] sm:$0xff]   ;;  %v3947_v12 = vld [vmem:[#allocation8 + $0x5e0] sm:$0xff]  }
 0x171   :  { %3072 = vmatprep.mubr.bf16.mxu0 %v1170_v42  ;;  %3112 = vmatprep.mubr.bf16.mxu1 %v1172_v9  ;;  %v3948_v5 = vld [vmem:[#allocation8 + $0x520] sm:$0xff]   ;;  %v3950_v9 = vld [vmem:[#allocation8 + $0x558] sm:$0xff]  }
 0x172   :  { %v3949_v42 = vld [vmem:[#allocation8 + $0x5a0] sm:$0xff]  }
 0x173   :  { %3679 = vmatpush3.bf16.msra.mxu0 %v3908_v56  ;;  %3701 = vmatpush3.bf16.msra.mxu1 %v3909_v13  ;;  %v3951_v56 = vld [vmem:[#allocation8 + $0x5d8] sm:$0xff]  }
 0x174   :  { %3680 = vmatprep.subr.bf16.mxu0 %v3910_v14  ;;  %3702 = vmatprep.subr.bf16.mxu1 %v3911_v15  ;;  %v3952_v13 = vld [vmem:[#allocation8 + $0x518] sm:$0xff]   ;;  %v3954_v15 = vld [vmem:[#allocation8 + $0x550] sm:$0xff]  }
 0x175   :  { %v3953_v14 = vld [vmem:[#allocation8 + $0x598] sm:$0xff]  }
 0x177   :  { %3681 = vmatpush3.bf16.msra.mxu0 %v3912_v16  ;;  %3703 = vmatpush3.bf16.msra.mxu1 %v3913_v17  ;;  %v3955_v16 = vld [vmem:[#allocation8 + $0x5d0] sm:$0xff]   ;;  %v244_v17 = vrot.slane %v4261_v35, %v4205_v63  ;;  %v3962_v63 = vld [vmem:[#allocation8 + $0x540] sm:$0xff]  }
 0x178   :  { %3682 = vmatprep.subr.bf16.mxu0 %v3914_v18  ;;  %3704 = vmatprep.subr.bf16.mxu1 %v3915_v19  ;;  %v3956_v18 = vld [vmem:[#allocation8 + $0x510] sm:$0xff]   ;;  %v236_v19 = vrot.slane %v4261_v35, %v4208_v1  ;;  %v3964_v1 = vld [vmem:[#allocation8 + $0x500] sm:$0xff]  }
 0x17b   :  { %3683 = vmatpush3.bf16.msra.mxu0 %v3916_v20  ;;  %3705 = vmatpush3.bf16.msra.mxu1 %v3917_v21  ;;  %v3957_v20 = vld [vmem:[#allocation8 + $0x590] sm:$0xff]   ;;  %v3958_v21 = vld [vmem:[#allocation8 + $0x548] sm:$0xff]  }
 0x17c   :  { %3684 = vmatprep.subr.bf16.mxu0 %v3918_v23  ;;  %3706 = vmatprep.subr.bf16.mxu1 %v3919_v57  ;;  %v3959_v23 = vld [vmem:[#allocation8 + $0x5c8] sm:$0xff]   ;;  %v1123_v57 = vadd.f32 %v4249_v33, %v244_v17 }
 0x17e   :  { %v1151_v0 = vmax.f32 %v1123_v57, 0.0 }
 0x17f   :  { %3685 = vmatpush3.bf16.msra.mxu0 %v3920_v24  ;;  %3707 = vmatpush3.bf16.msra.mxu1 %v3921_v25  ;;  %v3960_v24 = vld [vmem:[#allocation8 + $0x508] sm:$0xff]   ;;  %v1082_v25 = vadd.f32 %v4245_v29, %v236_v19 }
 0x180   :  { %3686 = vmatprep.subr.bf16.mxu0 %v3922_v26  ;;  %3708 = vmatprep.subr.bf16.mxu1 %v3923_v28  ;;  %v3961_v26 = vld [vmem:[#allocation8 + $0x588] sm:$0xff]   ;;  %v3963_v28 = vld [vmem:[#allocation8 + $0x5c0] sm:$0xff]   ;;  %v1175_v31 = vpack.c.bf16 %v1151_v0, %v1151_v0 }
 0x181   :  { %v1149_v35 = vmax.f32 %v1082_v25, 0.0 }
 0x183   :  { %3687 = vmatpush3.bf16.msra.mxu0 %v3924_v30  ;;  %3709 = vmatpush3.bf16.msra.mxu1 %v3925_v37  ;;  %v3965_v30 = vld [vmem:[#allocation8 + $0x580] sm:$0xff]   ;;  %v1173_v33 = vpack.c.bf16 %v1149_v35, %v1149_v35 }
 0x184   :  { %3688 = vmatprep.subr.bf16.mxu0 %v3926_v39  ;;  %3710 = vmatprep.subr.bf16.mxu1 %v3927_v41  ;;  %v3307_v39 = vld [vmem:[%s4303_s4] ss:$0 sm:$0xff]  ;;  %s4087_s4 = smov [#allocation10]  }
 0x185   :  { %s3212_s15 = sshll.u32 %s4087_s4, 4  ;;  %s3213_s15 = int_to_ptr.vmem [resolvable:$true] %s3212_s15 }
 0x186   :  { %s4050_s16 = scalar_lea.vmem %s3213_s15, 128  ;;  %p4055_p7 = scmp.lt.s32.totalorder %s3213_s15, %s3213_s15 }
 0x187   :  { %3689 = vmatpush3.bf16.msra.mxu0 %v3928_v59  ;;  %3711 = vmatpush3.bf16.msra.mxu1 %v3929_v58  ;;  %p4051_p6 = scmp.ne.s32.totalorder %s3213_s15, %s4050_s16  ;;  %p4056_p8 = scmp.lt.s32.totalorder %s4050_s16, %s4050_s16 }
 0x188   :  { %3690 = vmatprep.subr.bf16.mxu0 %v3930_v47  ;;  %3712 = vmatprep.subr.bf16.mxu1 %v3931_v48 }
 0x189   :  { %p4057_p9 = por %p4056_p8, %p4055_p7 }
 0x18b   :  { %3691 = vmatpush3.bf16.msra.mxu0 %v3932_v7  ;;  %3713 = vmatpush3.bf16.msra.mxu1 %v3933_v10  ;;  %p4058_p10 = pnand %p4057_p9, %p4051_p6 }
 0x18c   :  { %3720 = vmatprep.subr.bf16.mxu0 %v3934_v6  ;;  %3742 = vmatprep.subr.bf16.mxu1 %v3935_v8 }
 0x18e   :  { %3073 = vmatmul.mubr.bf16.vlgmr.msra.gmra.mxu0 %v1169_v4  ;;  %3113 = vmatmul.mubr.bf16.vlgmr.msra.gmra.mxu1 %v1171_v53 }
 0x18f   :  { %3721 = vmatpush3.bf16.msra.mxu0 %v3936_v60  ;;  %3743 = vmatpush3.bf16.msra.mxu1 %v3937_v32 }
 0x190   :  { %3722 = vmatprep.subr.bf16.mxu0 %v3938_v40  ;;  %3744 = vmatprep.subr.bf16.mxu1 %v3939_v61 }
 0x191   :  { %3152 = vmatprep.mubr.bf16.mxu0 %v1174_v38  ;;  %3192 = vmatprep.mubr.bf16.mxu1 %v1176_v54 }
 0x193   :  { %3723 = vmatpush3.bf16.msra.mxu0 %v3940_v36  ;;  %3745 = vmatpush3.bf16.msra.mxu1 %v3941_v55 }
 0x194   :  { %3724 = vmatprep.subr.bf16.mxu0 %v3942_v62  ;;  %3746 = vmatprep.subr.bf16.mxu1 %v3943_v2 }
 0x197   :  { %3725 = vmatpush3.bf16.msra.mxu0 %v3944_v3  ;;  %3747 = vmatpush3.bf16.msra.mxu1 %v3945_v34 }
 0x198   :  { %3726 = vmatprep.subr.bf16.mxu0 %v3946_v11  ;;  %3748 = vmatprep.subr.bf16.mxu1 %v3947_v12 }
 0x19b   :  { %3727 = vmatpush3.bf16.msra.mxu0 %v3948_v5  ;;  %3749 = vmatpush3.bf16.msra.mxu1 %v3949_v42 }
 0x19c   :  { %3728 = vmatprep.subr.bf16.mxu0 %v3950_v9  ;;  %3750 = vmatprep.subr.bf16.mxu1 %v3951_v56 }
 0x19f   :  { %3729 = vmatpush3.bf16.msra.mxu0 %v3952_v13  ;;  %3751 = vmatpush3.bf16.msra.mxu1 %v3953_v14 }
 0x1a0   :  { %3730 = vmatprep.subr.bf16.mxu0 %v3954_v15  ;;  %3752 = vmatprep.subr.bf16.mxu1 %v3955_v16 }
 0x1a3   :  { %3731 = vmatpush3.bf16.msra.mxu0 %v3956_v18  ;;  %3753 = vmatpush3.bf16.msra.mxu1 %v3957_v20 }
 0x1a4   :  { %3732 = vmatprep.subr.bf16.mxu0 %v3958_v21  ;;  %3754 = vmatprep.subr.bf16.mxu1 %v3959_v23 }
 0x1a7   :  { %3733 = vmatpush3.bf16.msra.mxu0 %v3960_v24  ;;  %3755 = vmatpush3.bf16.msra.mxu1 %v3961_v26 }
 0x1a8   :  { %3734 = vmatprep.subr.bf16.mxu0 %v3962_v63  ;;  %3756 = vmatprep.subr.bf16.mxu1 %v3963_v28 }
 0x1ab   :  { %3735 = vmatpush3.bf16.msra.mxu0 %v3964_v1  ;;  %3757 = vmatpush3.bf16.msra.mxu1 %v3965_v30 }
 0x1ae   :  { %3153 = vmatmul.mubr.bf16.vlgmr.msra.gmra.mxu0 %v1173_v33  ;;  %3193 = vmatmul.mubr.bf16.vlgmr.msra.gmra.mxu1 %v1175_v31 }
 0x1ce   :  { %v3516_v29 = vpop.f32.mrf.mxu0  ;;  %v3538_v37 = vpop.f32.mrf.mxu1 }
 0x1d0   :  { %v3517_v41 = vpop.f32.mrf.mxu0  ;;  %v3539_v44 = vpop.f32.mrf.mxu1 }
 0x1d1   :  { %v3518_v43 = vadd.f32 %v3517_v41, %v3516_v29  ;;  %v3540_v45 = vadd.f32 %v3539_v44, %v3538_v37 }
 0x1d2   :  { %v3519_v59 = vpop.f32.mrf.mxu0  ;;  %v3541_v58 = vpop.f32.mrf.mxu1 }
 0x1d3   :  { %v2755_v46 = vadd.f32 %v3518_v43, %v3307_v39 }
 0x1d4   :  { %v3520_v47 = vpop.f32.mrf.mxu0  ;;  %v3542_v49 = vpop.f32.mrf.mxu1 }
 0x1d5   :  { %v2795_v48 = vadd.f32 %v3540_v45, %v2755_v46 }
 0x1ee   :  { %v3560_v50 = vpop.f32.mrf.mxu0  ;;  %v3582_v22 = vpop.f32.mrf.mxu1 }
 0x1f0   :  { %v3561_v7 = vpop.f32.mrf.mxu0  ;;  %v3583_v10 = vpop.f32.mrf.mxu1 }
 0x1f1   :  { %v3562_v27 = vadd.f32 %v3561_v7, %v3560_v50  ;;  %v3584_v6 = vadd.f32 %v3583_v10, %v3582_v22 }
 0x1f2   :  { %v3563_v8 = vpop.f32.mrf.mxu0  ;;  %v3585_v52 = vpop.f32.mrf.mxu1 }
 0x1f3   :  { %v2835_v51 = vadd.f32 %v3562_v27, %v2795_v48 }
 0x1f4   :  { %v3564_v53 = vpop.f32.mrf.mxu0  ;;  %v3586_v4 = vpop.f32.mrf.mxu1 }
 0x1f5   :  { %v2875_v60 = vadd.f32 %v3584_v6, %v2835_v51 }
 0x20e   :  { %v3604_v32 = vpop.f32.mrf.mxu0  ;;  %v3626_v40 = vpop.f32.mrf.mxu1 }
 0x210   :  { %v3605_v61 = vpop.f32.mrf.mxu0  ;;  %v3627_v54 = vpop.f32.mrf.mxu1 }
 0x211   :  { %v3606_v38 = vadd.f32 %v3605_v61, %v3604_v32  ;;  %v3628_v36 = vadd.f32 %v3627_v54, %v3626_v40 }
 0x212   :  { %v3607_v55 = vpop.f32.mrf.mxu0  ;;  %v3629_v2 = vpop.f32.mrf.mxu1 }
 0x213   :  { %v2915_v62 = vadd.f32 %v3606_v38, %v2875_v60 }
 0x214   :  { %v3608_v3 = vpop.f32.mrf.mxu0  ;;  %v3630_v11 = vpop.f32.mrf.mxu1 }
 0x215   :  { %v2955_v34 = vadd.f32 %v3628_v36, %v2915_v62 }
 0x22e   :  { %v3648_v12 = vpop.f32.mrf.mxu0  ;;  %v3670_v5 = vpop.f32.mrf.mxu1 }
 0x230   :  { %v3649_v42 = vpop.f32.mrf.mxu0  ;;  %v3671_v9 = vpop.f32.mrf.mxu1 }
 0x231   :  { %v3650_v24 = vadd.f32 %v3649_v42, %v3648_v12  ;;  %v3672_v26 = vadd.f32 %v3671_v9, %v3670_v5 }
 0x232   :  { %v3651_v56 = vpop.f32.mrf.mxu0  ;;  %v3673_v13 = vpop.f32.mrf.mxu1 }
 0x233   :  { %v2995_v25 = vadd.f32 %v3650_v24, %v2955_v34 }
 0x234   :  { %v3652_v14 = vpop.f32.mrf.mxu0  ;;  %v3674_v15 = vpop.f32.mrf.mxu1 }
 0x235   :  { %v3035_v28 = vadd.f32 %v3672_v26, %v2995_v25 }
 0x24e   :  { %v3692_v16 = vpop.f32.mrf.mxu0  ;;  %v3714_v17 = vpop.f32.mrf.mxu1 }
 0x250   :  { %v3693_v18 = vpop.f32.mrf.mxu0  ;;  %v3715_v19 = vpop.f32.mrf.mxu1 }
 0x251   :  { %v3694_v63 = vadd.f32 %v3693_v18, %v3692_v16  ;;  %v3716_v35 = vadd.f32 %v3715_v19, %v3714_v17 }
 0x252   :  { %v3695_v20 = vpop.f32.mrf.mxu0  ;;  %v3717_v21 = vpop.f32.mrf.mxu1 }
 0x253   :  { %v3075_v0 = vadd.f32 %v3694_v63, %v3035_v28 }
 0x254   :  { %v3696_v23 = vpop.f32.mrf.mxu0  ;;  %v3718_v57 = vpop.f32.mrf.mxu1 }
 0x255   :  { %v3115_v33 = vadd.f32 %v3716_v35, %v3075_v0 }
 0x26e   :  { %v3736_v1 = vpop.f32.mrf.mxu0  ;;  %v3758_v30 = vpop.f32.mrf.mxu1 }
 0x270   :  { %v3737_v31 = vpop.f32.mrf.mxu0  ;;  %v3759_v37 = vpop.f32.mrf.mxu1 }
 0x271   :  { %v3738_v29 = vadd.f32 %v3737_v31, %v3736_v1  ;;  %v3760_v43 = vadd.f32 %v3759_v37, %v3758_v30 }
 0x272   :  { %v3739_v39 = vpop.f32.mrf.mxu0  ;;  %v3761_v44 = vpop.f32.mrf.mxu1 }
 0x273   :  { %v3155_v41 = vadd.f32 %v3738_v29, %v3115_v33 }
 0x274   :  { %v3740_v45 = vpop.f32.mrf.mxu0  ;;  %v3762_v46 = vpop.f32.mrf.mxu1 }
 0x275   :  { %v3195_v59 = vadd.f32 %v3760_v43, %v3155_v41 }
 0x277   :  { %v3200_v58 = vsub.f32 0.0, %v3195_v59 }
 0x279   :  { %v3201_v47 = vmul.f32 1.442695, %v3200_v58 }
 0x27b   :  { %3966 = vpow2.f32 %v3201_v47 }
 0x288   :  { %v3967_v48 = vpop.eup %3966 }
 0x289   :  { %v3203_v49 = vadd.f32 1.0, %v3967_v48 }
 0x28b   :  { %3968 = vrcp.f32 %v3203_v49 }
 0x298   :  { %v3969_v50 = vpop.eup %3968 }
 0x299   :  { %3205 = vst [vmem:[#allocation10] sm:$0xff] %v3969_v50 }
 0x29a   :  { %4061 = shalt.err (!%p4058_p10)
}
 0x29b   :  { %3215 = dma.vmem_to_hbm [thread:$0]  %s3213_s15, 128, %s4304_s5, [#allocation4]  }
 0x29c   :  { %4076 = dma.done.wait [#allocation4], 128  }
 0x29d   :  { %4077 = vsyncadd [#allocation4], 4294967168 }
 0x29e   :  { %3219 = vsyncpa [#allocation3], 1 }
 0x29f   :  { %3220 = vsyncpa [#allocation6], 1 }
 0x2a0   :  { %3221 = vsyncpa [#allocation9], 1 }
 0x2a1   :  { %3222 = vsyncpa [#allocation4], 1 }

</bundles_post_ra>
